<compile_context>
chip_gen: v7x
topology: tpu7x:2x2x1
jax: 0.10.0
libtpu: 0.0.40
codegen_flags: <defaults>
</compile_context>

<pallas_src>
import jax
import jax.numpy as jnp
from jax.experimental import pallas as pl
from jax.experimental.pallas import tpu as pltpu


def _round_up(n, m):
    return ((n + m - 1) // m) * m


def _make_ppeg_kernel(H, W, K):
    P = K // 2
    HW = H * W
    Hp = H + 2 * P
    Wp = _round_up(W + 2 * P, 8)      # sublane-tile aligned scratch width

    def kernel(x_ref, w_ref, b_ref, o_ref, pad_ref):
        # x_ref / o_ref : (1 + H*W, C) token block for one batch element
        # w_ref         : (K*K, C)    fused depthwise weights
        # b_ref         : (1, C)      fused bias
        # pad_ref       : (Hp, Wp, C) VMEM scratch (zero-padded grid, x.dtype)
        C = x_ref.shape[-1]
        pdt = pad_ref.dtype

        # cls token passes straight through (output block is written whole).
        o_ref[0:1, :] = x_ref[0:1, :]

        # Fill the zero-padded feature grid.  Only the halo border strips are
        # zeroed; the interior is fully overwritten.  Re-zeroed every step (not
        # once under program_id==0): scratch is core-local, so a core that
        # never runs step 0 would otherwise see an uninitialised halo.
        feat = x_ref[pl.ds(1, HW), :].reshape(H, W, C).astype(pdt)
        pad_ref[0:P, :, :] = jnp.zeros((P, Wp, C), pdt)                     # top
        pad_ref[P + H:Hp, :, :] = jnp.zeros((P, Wp, C), pdt)                # bottom
        pad_ref[P:P + H, 0:P, :] = jnp.zeros((H, P, C), pdt)                # left
        pad_ref[P:P + H, P + W:Wp, :] = jnp.zeros((H, Wp - P - W, C), pdt)  # right
        pad_ref[P:P + H, P:P + W, :] = feat                                 # data

        # Fused 49-tap depthwise conv, f32 accumulation.
        w_all = w_ref[...].astype(jnp.float32)        # (K*K, C) hoisted out of the tap loop
        acc = jnp.broadcast_to(b_ref[...].astype(jnp.float32), (H, W, C))
        for dy in range(K):
            # One aligned (H, Wp, C) row-strip load per dy ...
            strip = pad_ref[dy:dy + H, :, :].astype(jnp.float32)
            for dx in range(K):
                # ... and the dx shifts come from XLU rolls (no misaligned vlds).
                sh = strip if dx == 0 else pltpu.roll(strip, shift=Wp - dx, axis=1)
                acc = acc + sh[:, 0:W, :] * w_all[dy * K + dx]

        # Feature tokens back, flattened in row-major token order.
        o_ref[pl.ds(1, HW), :] = acc.reshape(HW, C).astype(o_ref.dtype)

    return kernel, (Hp, Wp)


def ppeg(x, H, W, w7, b7, w5, b5, w3, b3):
    """PPEG forward.

    x       : (B, 1 + H*W, C) tokens, cls token first
    w7/w5/w3: depthwise Conv2d weights, shapes (C, 1, k, k)
    b7/b5/b3: biases, shape (C,)
    """
    B, N, C = x.shape
    assert N == 1 + H * W, "x must hold a cls token plus H*W feature tokens"
    K = 7
    P = K // 2

    # Fold conv7 + conv5 + conv3 + identity EXACTLY into one 7x7 depthwise
    # kernel and one bias.
    w_eff = jnp.transpose(w7[:, 0], (1, 2, 0)).astype(jnp.float32)              # (7, 7, C)
    w_eff = w_eff.at[1:6, 1:6, :].add(jnp.transpose(w5[:, 0], (1, 2, 0)).astype(jnp.float32))
    w_eff = w_eff.at[2:5, 2:5, :].add(jnp.transpose(w3[:, 0], (1, 2, 0)).astype(jnp.float32))
    w_eff = w_eff.at[P, P, :].add(1.0)                                           # identity path
    w_eff = w_eff.reshape(K * K, C)
    b_eff = (b7 + b5 + b3).astype(jnp.float32).reshape(1, C)

    kernel, (Hp, Wp) = _make_ppeg_kernel(H, W, K)

    return pl.pallas_call(
        kernel,
        out_shape=jax.ShapeDtypeStruct((B, N, C), x.dtype),
        grid=(B,),
        in_specs=[
            pl.BlockSpec((None, N, C), lambda b: (b, 0, 0)),   # token block (aliased to out)
            pl.BlockSpec((K * K, C), lambda b: (0, 0)),        # fused weights
            pl.BlockSpec((1, C), lambda b: (0, 0)),            # fused bias
        ],
        out_specs=pl.BlockSpec((None, N, C), lambda b: (b, 0, 0)),
        scratch_shapes=[pltpu.VMEM((Hp, Wp, C), x.dtype)],
        input_output_aliases={0: 0},   # reuse x's HBM buffer (zero-copy when donated)
        compiler_params=pltpu.CompilerParams(
            dimension_semantics=("parallel",)),
    )(x, w_eff, b_eff)


if __name__ == "__main__":
    key = jax.random.PRNGKey(0)
    ks = jax.random.split(key, 7)

    B, H, W, C = 2, 8, 8, 128          # small shapes; N = 1 + H*W tokens
    N = 1 + H * W
    x = jax.random.normal(ks[0], (B, N, C), dtype=jnp.float32)
    w7 = 0.05 * jax.random.normal(ks[1], (C, 1, 7, 7), dtype=jnp.float32)
    b7 = 0.05 * jax.random.normal(ks[2], (C,), dtype=jnp.float32)
    w5 = 0.05 * jax.random.normal(ks[3], (C, 1, 5, 5), dtype=jnp.float32)
    b5 = 0.05 * jax.random.normal(ks[4], (C,), dtype=jnp.float32)
    w3 = 0.05 * jax.random.normal(ks[5], (C, 1, 3, 3), dtype=jnp.float32)
    b3 = 0.05 * jax.random.normal(ks[6], (C,), dtype=jnp.float32)

    # ---- pure-JAX reference (same math as the PyTorch module) ----
    # Computed BEFORE the kernel call: the kernel aliases x's buffer to its
    # output, so callers that donate x must not reuse it afterwards.
    def dwconv(x_nchw, w, b):
        k = w.shape[-1]
        y = jax.lax.conv_general_dilated(
            x_nchw, w, window_strides=(1, 1),
            padding=((k // 2, k // 2), (k // 2, k // 2)),
            feature_group_count=x_nchw.shape[1],
            dimension_numbers=("NCHW", "OIHW", "NCHW"))
        return y + b[None, :, None, None]

    cls_ref = x[:, 0]
    cnn = jnp.transpose(x[:, 1:], (0, 2, 1)).reshape(B, C, H, W)
    yr = dwconv(cnn, w7, b7) + cnn + dwconv(cnn, w5, b5) + dwconv(cnn, w3, b3)
    yr = jnp.transpose(yr.reshape(B, C, H * W), (0, 2, 1))
    ref = jax.block_until_ready(
        jnp.concatenate([cls_ref[:, None, :], yr], axis=1))

    out = jax.block_until_ready(ppeg(x, H, W, w7, b7, w5, b5, w3, b3))

    assert out.shape == (B, N, C) and out.dtype == jnp.float32
    max_err = float(jnp.max(jnp.abs(out - ref)))
    assert bool(jnp.allclose(out, ref, atol=1e-4, rtol=1e-4)), (
        f"PPEG mismatch, max abs err = {max_err}")

    print("KERNEL_OK")
</pallas_src>

<mosaic_0001>
module attributes {stable_mosaic.version = 11 : i64} {
  func.func @kernel(%arg0: i32, %arg1: memref<1x65x128xf32, #tpu.memory_space<vmem>>, %arg2: memref<49x128xf32, #tpu.memory_space<vmem>>, %arg3: memref<1x128xf32, #tpu.memory_space<vmem>>, %arg4: memref<1x65x128xf32, #tpu.memory_space<vmem>>, %arg5: memref<14x16x128xf32, #tpu.memory_space<vmem>>) attributes {dimension_semantics = [#tpu.dimension_semantics<parallel>], iteration_bounds = array<i64: 2>, scalar_prefetch = 0 : i64, scratch_operands = 1 : i64, tpu.core_type = #tpu.core_type<tc>, window_params = [{transform_indices = @transform_0, window_bounds = array<i64: 1, 65, 128>}, {pipeline_mode = #tpu.pipeline_mode<synchronous>, transform_indices = @transform_1, window_bounds = array<i64: 49, 128>}, {pipeline_mode = #tpu.pipeline_mode<synchronous>, transform_indices = @transform_2, window_bounds = array<i64: 1, 128>}, {transform_indices = @transform_3, window_bounds = array<i64: 1, 65, 128>}]} {
    %c0 = arith.constant 0 : index
    %c0_0 = arith.constant 0 : index
    %c0_1 = arith.constant 0 : index
    %0 = vector.load %arg1[%c0, %c0_0, %c0_1] : memref<1x65x128xf32, #tpu.memory_space<vmem>>, vector<1x1x128xf32>
    %1 = vector.shape_cast %0 : vector<1x1x128xf32> to vector<1x128xf32>
    %c0_2 = arith.constant 0 : index
    %c0_3 = arith.constant 0 : index
    %c0_4 = arith.constant 0 : index
    %2 = vector.load %arg4[%c0_2, %c0_3, %c0_4] : memref<1x65x128xf32, #tpu.memory_space<vmem>>, vector<1x1x128xf32>
    %3 = vector.shape_cast %2 : vector<1x1x128xf32> to vector<1x128xf32>
    %4 = vector.shape_cast %1 : vector<1x128xf32> to vector<1x1x128xf32>
    tpu.vector_store %arg4[%c0_2, %c0_3, %c0_4], %4 {strides = array<i32>} : memref<1x65x128xf32, #tpu.memory_space<vmem>>, vector<1x1x128xf32>,
    %c0_5 = arith.constant 0 : index
    %c1 = arith.constant 1 : index
    %c0_6 = arith.constant 0 : index
    %5 = vector.load %arg1[%c0_5, %c1, %c0_6] : memref<1x65x128xf32, #tpu.memory_space<vmem>>, vector<1x64x128xf32>
    %6 = vector.shape_cast %5 : vector<1x64x128xf32> to vector<64x128xf32>
    %7 = vector.shape_cast %6 : vector<64x128xf32> to vector<8x8x128xf32>
    %cst = arith.constant 0.000000e+00 : f32
    %8 = vector.broadcast %cst : f32 to vector<3x16x128xf32>
    %c0_7 = arith.constant 0 : index
    %c0_8 = arith.constant 0 : index
    %c0_9 = arith.constant 0 : index
    %9 = vector.load %arg5[%c0_7, %c0_8, %c0_9] : memref<14x16x128xf32, #tpu.memory_space<vmem>>, vector<3x16x128xf32>
    tpu.vector_store %arg5[%c0_7, %c0_8, %c0_9], %8 {strides = array<i32>} : memref<14x16x128xf32, #tpu.memory_space<vmem>>, vector<3x16x128xf32>,
    %cst_10 = arith.constant 0.000000e+00 : f32
    %10 = vector.broadcast %cst_10 : f32 to vector<3x16x128xf32>
    %c11 = arith.constant 11 : index
    %c0_11 = arith.constant 0 : index
    %c0_12 = arith.constant 0 : index
    %11 = vector.load %arg5[%c11, %c0_11, %c0_12] : memref<14x16x128xf32, #tpu.memory_space<vmem>>, vector<3x16x128xf32>
    tpu.vector_store %arg5[%c11, %c0_11, %c0_12], %10 {strides = array<i32>} : memref<14x16x128xf32, #tpu.memory_space<vmem>>, vector<3x16x128xf32>,
    %cst_13 = arith.constant 0.000000e+00 : f32
    %12 = vector.broadcast %cst_13 : f32 to vector<8x3x128xf32>
    %c3 = arith.constant 3 : index
    %c0_14 = arith.constant 0 : index
    %c0_15 = arith.constant 0 : index
    %13 = vector.load %arg5[%c3, %c0_14, %c0_15] : memref<14x16x128xf32, #tpu.memory_space<vmem>>, vector<8x3x128xf32>
    tpu.vector_store %arg5[%c3, %c0_14, %c0_15], %12 {strides = array<i32>} : memref<14x16x128xf32, #tpu.memory_space<vmem>>, vector<8x3x128xf32>,
    %cst_16 = arith.constant 0.000000e+00 : f32
    %14 = vector.broadcast %cst_16 : f32 to vector<8x5x128xf32>
    %c3_17 = arith.constant 3 : index
    %c11_18 = arith.constant 11 : index
    %c0_19 = arith.constant 0 : index
    %15 = vector.load %arg5[%c3_17, %c11_18, %c0_19] : memref<14x16x128xf32, #tpu.memory_space<vmem>>, vector<8x5x128xf32>
    tpu.vector_store %arg5[%c3_17, %c11_18, %c0_19], %14 {strides = array<i32>} : memref<14x16x128xf32, #tpu.memory_space<vmem>>, vector<8x5x128xf32>,
    %c3_20 = arith.constant 3 : index
    %c3_21 = arith.constant 3 : index
    %c0_22 = arith.constant 0 : index
    %16 = vector.load %arg5[%c3_20, %c3_21, %c0_22] : memref<14x16x128xf32, #tpu.memory_space<vmem>>, vector<8x8x128xf32>
    tpu.vector_store %arg5[%c3_20, %c3_21, %c0_22], %7 {strides = array<i32>} : memref<14x16x128xf32, #tpu.memory_space<vmem>>, vector<8x8x128xf32>,
    %c0_23 = arith.constant 0 : index
    %c0_24 = arith.constant 0 : index
    %17 = vector.load %arg2[%c0_23, %c0_24] : memref<49x128xf32, #tpu.memory_space<vmem>>, vector<49x128xf32>
    %c0_25 = arith.constant 0 : index
    %c0_26 = arith.constant 0 : index
    %18 = vector.load %arg3[%c0_25, %c0_26] : memref<1x128xf32, #tpu.memory_space<vmem>>, vector<1x128xf32>
    %19 = vector.shape_cast %18 : vector<1x128xf32> to vector<1x1x128xf32>
    %20 = vector.broadcast %19 : vector<1x1x128xf32> to vector<8x8x128xf32>
    %c0_27 = arith.constant 0 : index
    %c0_28 = arith.constant 0 : index
    %c0_29 = arith.constant 0 : index
    %21 = vector.load %arg5[%c0_27, %c0_28, %c0_29] : memref<14x16x128xf32, #tpu.memory_space<vmem>>, vector<8x16x128xf32>
    %22 = vector.extract_strided_slice %21 {offsets = [0, 0, 0], sizes = [8, 8, 128], strides = [1, 1, 1]} : vector<8x16x128xf32> to vector<8x8x128xf32>
    %23 = vector.extract_strided_slice %17 {offsets = [0, 0], sizes = [1, 128], strides = [1, 1]} : vector<49x128xf32> to vector<1x128xf32>
    %24 = vector.shape_cast %23 : vector<1x128xf32> to vector<128xf32>
    %25 = vector.shape_cast %24 : vector<128xf32> to vector<1x1x128xf32>
    %26 = vector.broadcast %25 : vector<1x1x128xf32> to vector<8x8x128xf32>
    %27 = arith.mulf %22, %26 : vector<8x8x128xf32>
    %28 = arith.addf %20, %27 : vector<8x8x128xf32>
    %c15_i32 = arith.constant 15 : i32
    %29 = tpu.dynamic_rotate %21 by %c15_i32 dim 1 : vector<8x16x128xf32>, i32 -> vector<8x16x128xf32>
    %30 = vector.extract_strided_slice %29 {offsets = [0, 0, 0], sizes = [8, 8, 128], strides = [1, 1, 1]} : vector<8x16x128xf32> to vector<8x8x128xf32>
    %31 = vector.extract_strided_slice %17 {offsets = [1, 0], sizes = [1, 128], strides = [1, 1]} : vector<49x128xf32> to vector<1x128xf32>
    %32 = vector.shape_cast %31 : vector<1x128xf32> to vector<128xf32>
    %33 = vector.shape_cast %32 : vector<128xf32> to vector<1x1x128xf32>
    %34 = vector.broadcast %33 : vector<1x1x128xf32> to vector<8x8x128xf32>
    %35 = arith.mulf %30, %34 : vector<8x8x128xf32>
    %36 = arith.addf %28, %35 : vector<8x8x128xf32>
    %c14_i32 = arith.constant 14 : i32
    %37 = tpu.dynamic_rotate %21 by %c14_i32 dim 1 : vector<8x16x128xf32>, i32 -> vector<8x16x128xf32>
    %38 = vector.extract_strided_slice %37 {offsets = [0, 0, 0], sizes = [8, 8, 128], strides = [1, 1, 1]} : vector<8x16x128xf32> to vector<8x8x128xf32>
    %39 = vector.extract_strided_slice %17 {offsets = [2, 0], sizes = [1, 128], strides = [1, 1]} : vector<49x128xf32> to vector<1x128xf32>
    %40 = vector.shape_cast %39 : vector<1x128xf32> to vector<128xf32>
    %41 = vector.shape_cast %40 : vector<128xf32> to vector<1x1x128xf32>
    %42 = vector.broadcast %41 : vector<1x1x128xf32> to vector<8x8x128xf32>
    %43 = arith.mulf %38, %42 : vector<8x8x128xf32>
    %44 = arith.addf %36, %43 : vector<8x8x128xf32>
    %c13_i32 = arith.constant 13 : i32
    %45 = tpu.dynamic_rotate %21 by %c13_i32 dim 1 : vector<8x16x128xf32>, i32 -> vector<8x16x128xf32>
    %46 = vector.extract_strided_slice %45 {offsets = [0, 0, 0], sizes = [8, 8, 128], strides = [1, 1, 1]} : vector<8x16x128xf32> to vector<8x8x128xf32>
    %47 = vector.extract_strided_slice %17 {offsets = [3, 0], sizes = [1, 128], strides = [1, 1]} : vector<49x128xf32> to vector<1x128xf32>
    %48 = vector.shape_cast %47 : vector<1x128xf32> to vector<128xf32>
    %49 = vector.shape_cast %48 : vector<128xf32> to vector<1x1x128xf32>
    %50 = vector.broadcast %49 : vector<1x1x128xf32> to vector<8x8x128xf32>
    %51 = arith.mulf %46, %50 : vector<8x8x128xf32>
    %52 = arith.addf %44, %51 : vector<8x8x128xf32>
    %c12_i32 = arith.constant 12 : i32
    %53 = tpu.dynamic_rotate %21 by %c12_i32 dim 1 : vector<8x16x128xf32>, i32 -> vector<8x16x128xf32>
    %54 = vector.extract_strided_slice %53 {offsets = [0, 0, 0], sizes = [8, 8, 128], strides = [1, 1, 1]} : vector<8x16x128xf32> to vector<8x8x128xf32>
    %55 = vector.extract_strided_slice %17 {offsets = [4, 0], sizes = [1, 128], strides = [1, 1]} : vector<49x128xf32> to vector<1x128xf32>
    %56 = vector.shape_cast %55 : vector<1x128xf32> to vector<128xf32>
    %57 = vector.shape_cast %56 : vector<128xf32> to vector<1x1x128xf32>
    %58 = vector.broadcast %57 : vector<1x1x128xf32> to vector<8x8x128xf32>
    %59 = arith.mulf %54, %58 : vector<8x8x128xf32>
    %60 = arith.addf %52, %59 : vector<8x8x128xf32>
    %c11_i32 = arith.constant 11 : i32
    %61 = tpu.dynamic_rotate %21 by %c11_i32 dim 1 : vector<8x16x128xf32>, i32 -> vector<8x16x128xf32>
    %62 = vector.extract_strided_slice %61 {offsets = [0, 0, 0], sizes = [8, 8, 128], strides = [1, 1, 1]} : vector<8x16x128xf32> to vector<8x8x128xf32>
    %63 = vector.extract_strided_slice %17 {offsets = [5, 0], sizes = [1, 128], strides = [1, 1]} : vector<49x128xf32> to vector<1x128xf32>
    %64 = vector.shape_cast %63 : vector<1x128xf32> to vector<128xf32>
    %65 = vector.shape_cast %64 : vector<128xf32> to vector<1x1x128xf32>
    %66 = vector.broadcast %65 : vector<1x1x128xf32> to vector<8x8x128xf32>
    %67 = arith.mulf %62, %66 : vector<8x8x128xf32>
    %68 = arith.addf %60, %67 : vector<8x8x128xf32>
    %c10_i32 = arith.constant 10 : i32
    %69 = tpu.dynamic_rotate %21 by %c10_i32 dim 1 : vector<8x16x128xf32>, i32 -> vector<8x16x128xf32>
    %70 = vector.extract_strided_slice %69 {offsets = [0, 0, 0], sizes = [8, 8, 128], strides = [1, 1, 1]} : vector<8x16x128xf32> to vector<8x8x128xf32>
    %71 = vector.extract_strided_slice %17 {offsets = [6, 0], sizes = [1, 128], strides = [1, 1]} : vector<49x128xf32> to vector<1x128xf32>
    %72 = vector.shape_cast %71 : vector<1x128xf32> to vector<128xf32>
    %73 = vector.shape_cast %72 : vector<128xf32> to vector<1x1x128xf32>
    %74 = vector.broadcast %73 : vector<1x1x128xf32> to vector<8x8x128xf32>
    %75 = arith.mulf %70, %74 : vector<8x8x128xf32>
    %76 = arith.addf %68, %75 : vector<8x8x128xf32>
    %c1_30 = arith.constant 1 : index
    %c0_31 = arith.constant 0 : index
    %c0_32 = arith.constant 0 : index
    %77 = vector.load %arg5[%c1_30, %c0_31, %c0_32] : memref<14x16x128xf32, #tpu.memory_space<vmem>>, vector<8x16x128xf32>
    %78 = vector.extract_strided_slice %77 {offsets = [0, 0, 0], sizes = [8, 8, 128], strides = [1, 1, 1]} : vector<8x16x128xf32> to vector<8x8x128xf32>
    %79 = vector.extract_strided_slice %17 {offsets = [7, 0], sizes = [1, 128], strides = [1, 1]} : vector<49x128xf32> to vector<1x128xf32>
    %80 = vector.shape_cast %79 : vector<1x128xf32> to vector<128xf32>
    %81 = vector.shape_cast %80 : vector<128xf32> to vector<1x1x128xf32>
    %82 = vector.broadcast %81 : vector<1x1x128xf32> to vector<8x8x128xf32>
    %83 = arith.mulf %78, %82 : vector<8x8x128xf32>
    %84 = arith.addf %76, %83 : vector<8x8x128xf32>
    %c15_i32_33 = arith.constant 15 : i32
    %85 = tpu.dynamic_rotate %77 by %c15_i32_33 dim 1 : vector<8x16x128xf32>, i32 -> vector<8x16x128xf32>
    %86 = vector.extract_strided_slice %85 {offsets = [0, 0, 0], sizes = [8, 8, 128], strides = [1, 1, 1]} : vector<8x16x128xf32> to vector<8x8x128xf32>
    %87 = vector.extract_strided_slice %17 {offsets = [8, 0], sizes = [1, 128], strides = [1, 1]} : vector<49x128xf32> to vector<1x128xf32>
    %88 = vector.shape_cast %87 : vector<1x128xf32> to vector<128xf32>
    %89 = vector.shape_cast %88 : vector<128xf32> to vector<1x1x128xf32>
    %90 = vector.broadcast %89 : vector<1x1x128xf32> to vector<8x8x128xf32>
    %91 = arith.mulf %86, %90 : vector<8x8x128xf32>
    %92 = arith.addf %84, %91 : vector<8x8x128xf32>
    %c14_i32_34 = arith.constant 14 : i32
    %93 = tpu.dynamic_rotate %77 by %c14_i32_34 dim 1 : vector<8x16x128xf32>, i32 -> vector<8x16x128xf32>
    %94 = vector.extract_strided_slice %93 {offsets = [0, 0, 0], sizes = [8, 8, 128], strides = [1, 1, 1]} : vector<8x16x128xf32> to vector<8x8x128xf32>
    %95 = vector.extract_strided_slice %17 {offsets = [9, 0], sizes = [1, 128], strides = [1, 1]} : vector<49x128xf32> to vector<1x128xf32>
    %96 = vector.shape_cast %95 : vector<1x128xf32> to vector<128xf32>
    %97 = vector.shape_cast %96 : vector<128xf32> to vector<1x1x128xf32>
    %98 = vector.broadcast %97 : vector<1x1x128xf32> to vector<8x8x128xf32>
    %99 = arith.mulf %94, %98 : vector<8x8x128xf32>
    %100 = arith.addf %92, %99 : vector<8x8x128xf32>
    %c13_i32_35 = arith.constant 13 : i32
    %101 = tpu.dynamic_rotate %77 by %c13_i32_35 dim 1 : vector<8x16x128xf32>, i32 -> vector<8x16x128xf32>
    %102 = vector.extract_strided_slice %101 {offsets = [0, 0, 0], sizes = [8, 8, 128], strides = [1, 1, 1]} : vector<8x16x128xf32> to vector<8x8x128xf32>
    %103 = vector.extract_strided_slice %17 {offsets = [10, 0], sizes = [1, 128], strides = [1, 1]} : vector<49x128xf32> to vector<1x128xf32>
    %104 = vector.shape_cast %103 : vector<1x128xf32> to vector<128xf32>
    %105 = vector.shape_cast %104 : vector<128xf32> to vector<1x1x128xf32>
    %106 = vector.broadcast %105 : vector<1x1x128xf32> to vector<8x8x128xf32>
    %107 = arith.mulf %102, %106 : vector<8x8x128xf32>
    %108 = arith.addf %100, %107 : vector<8x8x128xf32>
    %c12_i32_36 = arith.constant 12 : i32
    %109 = tpu.dynamic_rotate %77 by %c12_i32_36 dim 1 : vector<8x16x128xf32>, i32 -> vector<8x16x128xf32>
    %110 = vector.extract_strided_slice %109 {offsets = [0, 0, 0], sizes = [8, 8, 128], strides = [1, 1, 1]} : vector<8x16x128xf32> to vector<8x8x128xf32>
    %111 = vector.extract_strided_slice %17 {offsets = [11, 0], sizes = [1, 128], strides = [1, 1]} : vector<49x128xf32> to vector<1x128xf32>
    %112 = vector.shape_cast %111 : vector<1x128xf32> to vector<128xf32>
    %113 = vector.shape_cast %112 : vector<128xf32> to vector<1x1x128xf32>
    %114 = vector.broadcast %113 : vector<1x1x128xf32> to vector<8x8x128xf32>
    %115 = arith.mulf %110, %114 : vector<8x8x128xf32>
    %116 = arith.addf %108, %115 : vector<8x8x128xf32>
    %c11_i32_37 = arith.constant 11 : i32
    %117 = tpu.dynamic_rotate %77 by %c11_i32_37 dim 1 : vector<8x16x128xf32>, i32 -> vector<8x16x128xf32>
    %118 = vector.extract_strided_slice %117 {offsets = [0, 0, 0], sizes = [8, 8, 128], strides = [1, 1, 1]} : vector<8x16x128xf32> to vector<8x8x128xf32>
    %119 = vector.extract_strided_slice %17 {offsets = [12, 0], sizes = [1, 128], strides = [1, 1]} : vector<49x128xf32> to vector<1x128xf32>
    %120 = vector.shape_cast %119 : vector<1x128xf32> to vector<128xf32>
    %121 = vector.shape_cast %120 : vector<128xf32> to vector<1x1x128xf32>
    %122 = vector.broadcast %121 : vector<1x1x128xf32> to vector<8x8x128xf32>
    %123 = arith.mulf %118, %122 : vector<8x8x128xf32>
    %124 = arith.addf %116, %123 : vector<8x8x128xf32>
    %c10_i32_38 = arith.constant 10 : i32
    %125 = tpu.dynamic_rotate %77 by %c10_i32_38 dim 1 : vector<8x16x128xf32>, i32 -> vector<8x16x128xf32>
    %126 = vector.extract_strided_slice %125 {offsets = [0, 0, 0], sizes = [8, 8, 128], strides = [1, 1, 1]} : vector<8x16x128xf32> to vector<8x8x128xf32>
    %127 = vector.extract_strided_slice %17 {offsets = [13, 0], sizes = [1, 128], strides = [1, 1]} : vector<49x128xf32> to vector<1x128xf32>
    %128 = vector.shape_cast %127 : vector<1x128xf32> to vector<128xf32>
    %129 = vector.shape_cast %128 : vector<128xf32> to vector<1x1x128xf32>
    %130 = vector.broadcast %129 : vector<1x1x128xf32> to vector<8x8x128xf32>
    %131 = arith.mulf %126, %130 : vector<8x8x128xf32>
    %132 = arith.addf %124, %131 : vector<8x8x128xf32>
    %c2 = arith.constant 2 : index
    %c0_39 = arith.constant 0 : index
    %c0_40 = arith.constant 0 : index
    %133 = vector.load %arg5[%c2, %c0_39, %c0_40] : memref<14x16x128xf32, #tpu.memory_space<vmem>>, vector<8x16x128xf32>
    %134 = vector.extract_strided_slice %133 {offsets = [0, 0, 0], sizes = [8, 8, 128], strides = [1, 1, 1]} : vector<8x16x128xf32> to vector<8x8x128xf32>
    %135 = vector.extract_strided_slice %17 {offsets = [14, 0], sizes = [1, 128], strides = [1, 1]} : vector<49x128xf32> to vector<1x128xf32>
    %136 = vector.shape_cast %135 : vector<1x128xf32> to vector<128xf32>
    %137 = vector.shape_cast %136 : vector<128xf32> to vector<1x1x128xf32>
    %138 = vector.broadcast %137 : vector<1x1x128xf32> to vector<8x8x128xf32>
    %139 = arith.mulf %134, %138 : vector<8x8x128xf32>
    %140 = arith.addf %132, %139 : vector<8x8x128xf32>
    %c15_i32_41 = arith.constant 15 : i32
    %141 = tpu.dynamic_rotate %133 by %c15_i32_41 dim 1 : vector<8x16x128xf32>, i32 -> vector<8x16x128xf32>
    %142 = vector.extract_strided_slice %141 {offsets = [0, 0, 0], sizes = [8, 8, 128], strides = [1, 1, 1]} : vector<8x16x128xf32> to vector<8x8x128xf32>
    %143 = vector.extract_strided_slice %17 {offsets = [15, 0], sizes = [1, 128], strides = [1, 1]} : vector<49x128xf32> to vector<1x128xf32>
    %144 = vector.shape_cast %143 : vector<1x128xf32> to vector<128xf32>
    %145 = vector.shape_cast %144 : vector<128xf32> to vector<1x1x128xf32>
    %146 = vector.broadcast %145 : vector<1x1x128xf32> to vector<8x8x128xf32>
    %147 = arith.mulf %142, %146 : vector<8x8x128xf32>
    %148 = arith.addf %140, %147 : vector<8x8x128xf32>
    %c14_i32_42 = arith.constant 14 : i32
    %149 = tpu.dynamic_rotate %133 by %c14_i32_42 dim 1 : vector<8x16x128xf32>, i32 -> vector<8x16x128xf32>
    %150 = vector.extract_strided_slice %149 {offsets = [0, 0, 0], sizes = [8, 8, 128], strides = [1, 1, 1]} : vector<8x16x128xf32> to vector<8x8x128xf32>
    %151 = vector.extract_strided_slice %17 {offsets = [16, 0], sizes = [1, 128], strides = [1, 1]} : vector<49x128xf32> to vector<1x128xf32>
    %152 = vector.shape_cast %151 : vector<1x128xf32> to vector<128xf32>
    %153 = vector.shape_cast %152 : vector<128xf32> to vector<1x1x128xf32>
    %154 = vector.broadcast %153 : vector<1x1x128xf32> to vector<8x8x128xf32>
    %155 = arith.mulf %150, %154 : vector<8x8x128xf32>
    %156 = arith.addf %148, %155 : vector<8x8x128xf32>
    %c13_i32_43 = arith.constant 13 : i32
    %157 = tpu.dynamic_rotate %133 by %c13_i32_43 dim 1 : vector<8x16x128xf32>, i32 -> vector<8x16x128xf32>
    %158 = vector.extract_strided_slice %157 {offsets = [0, 0, 0], sizes = [8, 8, 128], strides = [1, 1, 1]} : vector<8x16x128xf32> to vector<8x8x128xf32>
    %159 = vector.extract_strided_slice %17 {offsets = [17, 0], sizes = [1, 128], strides = [1, 1]} : vector<49x128xf32> to vector<1x128xf32>
    %160 = vector.shape_cast %159 : vector<1x128xf32> to vector<128xf32>
    %161 = vector.shape_cast %160 : vector<128xf32> to vector<1x1x128xf32>
    %162 = vector.broadcast %161 : vector<1x1x128xf32> to vector<8x8x128xf32>
    %163 = arith.mulf %158, %162 : vector<8x8x128xf32>
    %164 = arith.addf %156, %163 : vector<8x8x128xf32>
    %c12_i32_44 = arith.constant 12 : i32
    %165 = tpu.dynamic_rotate %133 by %c12_i32_44 dim 1 : vector<8x16x128xf32>, i32 -> vector<8x16x128xf32>
    %166 = vector.extract_strided_slice %165 {offsets = [0, 0, 0], sizes = [8, 8, 128], strides = [1, 1, 1]} : vector<8x16x128xf32> to vector<8x8x128xf32>
    %167 = vector.extract_strided_slice %17 {offsets = [18, 0], sizes = [1, 128], strides = [1, 1]} : vector<49x128xf32> to vector<1x128xf32>
    %168 = vector.shape_cast %167 : vector<1x128xf32> to vector<128xf32>
    %169 = vector.shape_cast %168 : vector<128xf32> to vector<1x1x128xf32>
    %170 = vector.broadcast %169 : vector<1x1x128xf32> to vector<8x8x128xf32>
    %171 = arith.mulf %166, %170 : vector<8x8x128xf32>
    %172 = arith.addf %164, %171 : vector<8x8x128xf32>
    %c11_i32_45 = arith.constant 11 : i32
    %173 = tpu.dynamic_rotate %133 by %c11_i32_45 dim 1 : vector<8x16x128xf32>, i32 -> vector<8x16x128xf32>
    %174 = vector.extract_strided_slice %173 {offsets = [0, 0, 0], sizes = [8, 8, 128], strides = [1, 1, 1]} : vector<8x16x128xf32> to vector<8x8x128xf32>
    %175 = vector.extract_strided_slice %17 {offsets = [19, 0], sizes = [1, 128], strides = [1, 1]} : vector<49x128xf32> to vector<1x128xf32>
    %176 = vector.shape_cast %175 : vector<1x128xf32> to vector<128xf32>
    %177 = vector.shape_cast %176 : vector<128xf32> to vector<1x1x128xf32>
    %178 = vector.broadcast %177 : vector<1x1x128xf32> to vector<8x8x128xf32>
    %179 = arith.mulf %174, %178 : vector<8x8x128xf32>
    %180 = arith.addf %172, %179 : vector<8x8x128xf32>
    %c10_i32_46 = arith.constant 10 : i32
    %181 = tpu.dynamic_rotate %133 by %c10_i32_46 dim 1 : vector<8x16x128xf32>, i32 -> vector<8x16x128xf32>
    %182 = vector.extract_strided_slice %181 {offsets = [0, 0, 0], sizes = [8, 8, 128], strides = [1, 1, 1]} : vector<8x16x128xf32> to vector<8x8x128xf32>
    %183 = vector.extract_strided_slice %17 {offsets = [20, 0], sizes = [1, 128], strides = [1, 1]} : vector<49x128xf32> to vector<1x128xf32>
    %184 = vector.shape_cast %183 : vector<1x128xf32> to vector<128xf32>
    %185 = vector.shape_cast %184 : vector<128xf32> to vector<1x1x128xf32>
    %186 = vector.broadcast %185 : vector<1x1x128xf32> to vector<8x8x128xf32>
    %187 = arith.mulf %182, %186 : vector<8x8x128xf32>
    %188 = arith.addf %180, %187 : vector<8x8x128xf32>
    %c3_47 = arith.constant 3 : index
    %c0_48 = arith.constant 0 : index
    %c0_49 = arith.constant 0 : index
    %189 = vector.load %arg5[%c3_47, %c0_48, %c0_49] : memref<14x16x128xf32, #tpu.memory_space<vmem>>, vector<8x16x128xf32>
    %190 = vector.extract_strided_slice %189 {offsets = [0, 0, 0], sizes = [8, 8, 128], strides = [1, 1, 1]} : vector<8x16x128xf32> to vector<8x8x128xf32>
    %191 = vector.extract_strided_slice %17 {offsets = [21, 0], sizes = [1, 128], strides = [1, 1]} : vector<49x128xf32> to vector<1x128xf32>
    %192 = vector.shape_cast %191 : vector<1x128xf32> to vector<128xf32>
    %193 = vector.shape_cast %192 : vector<128xf32> to vector<1x1x128xf32>
    %194 = vector.broadcast %193 : vector<1x1x128xf32> to vector<8x8x128xf32>
    %195 = arith.mulf %190, %194 : vector<8x8x128xf32>
    %196 = arith.addf %188, %195 : vector<8x8x128xf32>
    %c15_i32_50 = arith.constant 15 : i32
    %197 = tpu.dynamic_rotate %189 by %c15_i32_50 dim 1 : vector<8x16x128xf32>, i32 -> vector<8x16x128xf32>
    %198 = vector.extract_strided_slice %197 {offsets = [0, 0, 0], sizes = [8, 8, 128], strides = [1, 1, 1]} : vector<8x16x128xf32> to vector<8x8x128xf32>
    %199 = vector.extract_strided_slice %17 {offsets = [22, 0], sizes = [1, 128], strides = [1, 1]} : vector<49x128xf32> to vector<1x128xf32>
    %200 = vector.shape_cast %199 : vector<1x128xf32> to vector<128xf32>
    %201 = vector.shape_cast %200 : vector<128xf32> to vector<1x1x128xf32>
    %202 = vector.broadcast %201 : vector<1x1x128xf32> to vector<8x8x128xf32>
    %203 = arith.mulf %198, %202 : vector<8x8x128xf32>
    %204 = arith.addf %196, %203 : vector<8x8x128xf32>
    %c14_i32_51 = arith.constant 14 : i32
    %205 = tpu.dynamic_rotate %189 by %c14_i32_51 dim 1 : vector<8x16x128xf32>, i32 -> vector<8x16x128xf32>
    %206 = vector.extract_strided_slice %205 {offsets = [0, 0, 0], sizes = [8, 8, 128], strides = [1, 1, 1]} : vector<8x16x128xf32> to vector<8x8x128xf32>
    %207 = vector.extract_strided_slice %17 {offsets = [23, 0], sizes = [1, 128], strides = [1, 1]} : vector<49x128xf32> to vector<1x128xf32>
    %208 = vector.shape_cast %207 : vector<1x128xf32> to vector<128xf32>
    %209 = vector.shape_cast %208 : vector<128xf32> to vector<1x1x128xf32>
    %210 = vector.broadcast %209 : vector<1x1x128xf32> to vector<8x8x128xf32>
    %211 = arith.mulf %206, %210 : vector<8x8x128xf32>
    %212 = arith.addf %204, %211 : vector<8x8x128xf32>
    %c13_i32_52 = arith.constant 13 : i32
    %213 = tpu.dynamic_rotate %189 by %c13_i32_52 dim 1 : vector<8x16x128xf32>, i32 -> vector<8x16x128xf32>
    %214 = vector.extract_strided_slice %213 {offsets = [0, 0, 0], sizes = [8, 8, 128], strides = [1, 1, 1]} : vector<8x16x128xf32> to vector<8x8x128xf32>
    %215 = vector.extract_strided_slice %17 {offsets = [24, 0], sizes = [1, 128], strides = [1, 1]} : vector<49x128xf32> to vector<1x128xf32>
    %216 = vector.shape_cast %215 : vector<1x128xf32> to vector<128xf32>
    %217 = vector.shape_cast %216 : vector<128xf32> to vector<1x1x128xf32>
    %218 = vector.broadcast %217 : vector<1x1x128xf32> to vector<8x8x128xf32>
    %219 = arith.mulf %214, %218 : vector<8x8x128xf32>
    %220 = arith.addf %212, %219 : vector<8x8x128xf32>
    %c12_i32_53 = arith.constant 12 : i32
    %221 = tpu.dynamic_rotate %189 by %c12_i32_53 dim 1 : vector<8x16x128xf32>, i32 -> vector<8x16x128xf32>
    %222 = vector.extract_strided_slice %221 {offsets = [0, 0, 0], sizes = [8, 8, 128], strides = [1, 1, 1]} : vector<8x16x128xf32> to vector<8x8x128xf32>
    %223 = vector.extract_strided_slice %17 {offsets = [25, 0], sizes = [1, 128], strides = [1, 1]} : vector<49x128xf32> to vector<1x128xf32>
    %224 = vector.shape_cast %223 : vector<1x128xf32> to vector<128xf32>
    %225 = vector.shape_cast %224 : vector<128xf32> to vector<1x1x128xf32>
    %226 = vector.broadcast %225 : vector<1x1x128xf32> to vector<8x8x128xf32>
    %227 = arith.mulf %222, %226 : vector<8x8x128xf32>
    %228 = arith.addf %220, %227 : vector<8x8x128xf32>
    %c11_i32_54 = arith.constant 11 : i32
    %229 = tpu.dynamic_rotate %189 by %c11_i32_54 dim 1 : vector<8x16x128xf32>, i32 -> vector<8x16x128xf32>
    %230 = vector.extract_strided_slice %229 {offsets = [0, 0, 0], sizes = [8, 8, 128], strides = [1, 1, 1]} : vector<8x16x128xf32> to vector<8x8x128xf32>
    %231 = vector.extract_strided_slice %17 {offsets = [26, 0], sizes = [1, 128], strides = [1, 1]} : vector<49x128xf32> to vector<1x128xf32>
    %232 = vector.shape_cast %231 : vector<1x128xf32> to vector<128xf32>
    %233 = vector.shape_cast %232 : vector<128xf32> to vector<1x1x128xf32>
    %234 = vector.broadcast %233 : vector<1x1x128xf32> to vector<8x8x128xf32>
    %235 = arith.mulf %230, %234 : vector<8x8x128xf32>
    %236 = arith.addf %228, %235 : vector<8x8x128xf32>
    %c10_i32_55 = arith.constant 10 : i32
    %237 = tpu.dynamic_rotate %189 by %c10_i32_55 dim 1 : vector<8x16x128xf32>, i32 -> vector<8x16x128xf32>
    %238 = vector.extract_strided_slice %237 {offsets = [0, 0, 0], sizes = [8, 8, 128], strides = [1, 1, 1]} : vector<8x16x128xf32> to vector<8x8x128xf32>
    %239 = vector.extract_strided_slice %17 {offsets = [27, 0], sizes = [1, 128], strides = [1, 1]} : vector<49x128xf32> to vector<1x128xf32>
    %240 = vector.shape_cast %239 : vector<1x128xf32> to vector<128xf32>
    %241 = vector.shape_cast %240 : vector<128xf32> to vector<1x1x128xf32>
    %242 = vector.broadcast %241 : vector<1x1x128xf32> to vector<8x8x128xf32>
    %243 = arith.mulf %238, %242 : vector<8x8x128xf32>
    %244 = arith.addf %236, %243 : vector<8x8x128xf32>
    %c4 = arith.constant 4 : index
    %c0_56 = arith.constant 0 : index
    %c0_57 = arith.constant 0 : index
    %245 = vector.load %arg5[%c4, %c0_56, %c0_57] : memref<14x16x128xf32, #tpu.memory_space<vmem>>, vector<8x16x128xf32>
    %246 = vector.extract_strided_slice %245 {offsets = [0, 0, 0], sizes = [8, 8, 128], strides = [1, 1, 1]} : vector<8x16x128xf32> to vector<8x8x128xf32>
    %247 = vector.extract_strided_slice %17 {offsets = [28, 0], sizes = [1, 128], strides = [1, 1]} : vector<49x128xf32> to vector<1x128xf32>
    %248 = vector.shape_cast %247 : vector<1x128xf32> to vector<128xf32>
    %249 = vector.shape_cast %248 : vector<128xf32> to vector<1x1x128xf32>
    %250 = vector.broadcast %249 : vector<1x1x128xf32> to vector<8x8x128xf32>
    %251 = arith.mulf %246, %250 : vector<8x8x128xf32>
    %252 = arith.addf %244, %251 : vector<8x8x128xf32>
    %c15_i32_58 = arith.constant 15 : i32
    %253 = tpu.dynamic_rotate %245 by %c15_i32_58 dim 1 : vector<8x16x128xf32>, i32 -> vector<8x16x128xf32>
    %254 = vector.extract_strided_slice %253 {offsets = [0, 0, 0], sizes = [8, 8, 128], strides = [1, 1, 1]} : vector<8x16x128xf32> to vector<8x8x128xf32>
    %255 = vector.extract_strided_slice %17 {offsets = [29, 0], sizes = [1, 128], strides = [1, 1]} : vector<49x128xf32> to vector<1x128xf32>
    %256 = vector.shape_cast %255 : vector<1x128xf32> to vector<128xf32>
    %257 = vector.shape_cast %256 : vector<128xf32> to vector<1x1x128xf32>
    %258 = vector.broadcast %257 : vector<1x1x128xf32> to vector<8x8x128xf32>
    %259 = arith.mulf %254, %258 : vector<8x8x128xf32>
    %260 = arith.addf %252, %259 : vector<8x8x128xf32>
    %c14_i32_59 = arith.constant 14 : i32
    %261 = tpu.dynamic_rotate %245 by %c14_i32_59 dim 1 : vector<8x16x128xf32>, i32 -> vector<8x16x128xf32>
    %262 = vector.extract_strided_slice %261 {offsets = [0, 0, 0], sizes = [8, 8, 128], strides = [1, 1, 1]} : vector<8x16x128xf32> to vector<8x8x128xf32>
    %263 = vector.extract_strided_slice %17 {offsets = [30, 0], sizes = [1, 128], strides = [1, 1]} : vector<49x128xf32> to vector<1x128xf32>
    %264 = vector.shape_cast %263 : vector<1x128xf32> to vector<128xf32>
    %265 = vector.shape_cast %264 : vector<128xf32> to vector<1x1x128xf32>
    %266 = vector.broadcast %265 : vector<1x1x128xf32> to vector<8x8x128xf32>
    %267 = arith.mulf %262, %266 : vector<8x8x128xf32>
    %268 = arith.addf %260, %267 : vector<8x8x128xf32>
    %c13_i32_60 = arith.constant 13 : i32
    %269 = tpu.dynamic_rotate %245 by %c13_i32_60 dim 1 : vector<8x16x128xf32>, i32 -> vector<8x16x128xf32>
    %270 = vector.extract_strided_slice %269 {offsets = [0, 0, 0], sizes = [8, 8, 128], strides = [1, 1, 1]} : vector<8x16x128xf32> to vector<8x8x128xf32>
    %271 = vector.extract_strided_slice %17 {offsets = [31, 0], sizes = [1, 128], strides = [1, 1]} : vector<49x128xf32> to vector<1x128xf32>
    %272 = vector.shape_cast %271 : vector<1x128xf32> to vector<128xf32>
    %273 = vector.shape_cast %272 : vector<128xf32> to vector<1x1x128xf32>
    %274 = vector.broadcast %273 : vector<1x1x128xf32> to vector<8x8x128xf32>
    %275 = arith.mulf %270, %274 : vector<8x8x128xf32>
    %276 = arith.addf %268, %275 : vector<8x8x128xf32>
    %c12_i32_61 = arith.constant 12 : i32
    %277 = tpu.dynamic_rotate %245 by %c12_i32_61 dim 1 : vector<8x16x128xf32>, i32 -> vector<8x16x128xf32>
    %278 = vector.extract_strided_slice %277 {offsets = [0, 0, 0], sizes = [8, 8, 128], strides = [1, 1, 1]} : vector<8x16x128xf32> to vector<8x8x128xf32>
    %279 = vector.extract_strided_slice %17 {offsets = [32, 0], sizes = [1, 128], strides = [1, 1]} : vector<49x128xf32> to vector<1x128xf32>
    %280 = vector.shape_cast %279 : vector<1x128xf32> to vector<128xf32>
    %281 = vector.shape_cast %280 : vector<128xf32> to vector<1x1x128xf32>
    %282 = vector.broadcast %281 : vector<1x1x128xf32> to vector<8x8x128xf32>
    %283 = arith.mulf %278, %282 : vector<8x8x128xf32>
    %284 = arith.addf %276, %283 : vector<8x8x128xf32>
    %c11_i32_62 = arith.constant 11 : i32
    %285 = tpu.dynamic_rotate %245 by %c11_i32_62 dim 1 : vector<8x16x128xf32>, i32 -> vector<8x16x128xf32>
    %286 = vector.extract_strided_slice %285 {offsets = [0, 0, 0], sizes = [8, 8, 128], strides = [1, 1, 1]} : vector<8x16x128xf32> to vector<8x8x128xf32>
    %287 = vector.extract_strided_slice %17 {offsets = [33, 0], sizes = [1, 128], strides = [1, 1]} : vector<49x128xf32> to vector<1x128xf32>
    %288 = vector.shape_cast %287 : vector<1x128xf32> to vector<128xf32>
    %289 = vector.shape_cast %288 : vector<128xf32> to vector<1x1x128xf32>
    %290 = vector.broadcast %289 : vector<1x1x128xf32> to vector<8x8x128xf32>
    %291 = arith.mulf %286, %290 : vector<8x8x128xf32>
    %292 = arith.addf %284, %291 : vector<8x8x128xf32>
    %c10_i32_63 = arith.constant 10 : i32
    %293 = tpu.dynamic_rotate %245 by %c10_i32_63 dim 1 : vector<8x16x128xf32>, i32 -> vector<8x16x128xf32>
    %294 = vector.extract_strided_slice %293 {offsets = [0, 0, 0], sizes = [8, 8, 128], strides = [1, 1, 1]} : vector<8x16x128xf32> to vector<8x8x128xf32>
    %295 = vector.extract_strided_slice %17 {offsets = [34, 0], sizes = [1, 128], strides = [1, 1]} : vector<49x128xf32> to vector<1x128xf32>
    %296 = vector.shape_cast %295 : vector<1x128xf32> to vector<128xf32>
    %297 = vector.shape_cast %296 : vector<128xf32> to vector<1x1x128xf32>
    %298 = vector.broadcast %297 : vector<1x1x128xf32> to vector<8x8x128xf32>
    %299 = arith.mulf %294, %298 : vector<8x8x128xf32>
    %300 = arith.addf %292, %299 : vector<8x8x128xf32>
    %c5 = arith.constant 5 : index
    %c0_64 = arith.constant 0 : index
    %c0_65 = arith.constant 0 : index
    %301 = vector.load %arg5[%c5, %c0_64, %c0_65] : memref<14x16x128xf32, #tpu.memory_space<vmem>>, vector<8x16x128xf32>
    %302 = vector.extract_strided_slice %301 {offsets = [0, 0, 0], sizes = [8, 8, 128], strides = [1, 1, 1]} : vector<8x16x128xf32> to vector<8x8x128xf32>
    %303 = vector.extract_strided_slice %17 {offsets = [35, 0], sizes = [1, 128], strides = [1, 1]} : vector<49x128xf32> to vector<1x128xf32>
    %304 = vector.shape_cast %303 : vector<1x128xf32> to vector<128xf32>
    %305 = vector.shape_cast %304 : vector<128xf32> to vector<1x1x128xf32>
    %306 = vector.broadcast %305 : vector<1x1x128xf32> to vector<8x8x128xf32>
    %307 = arith.mulf %302, %306 : vector<8x8x128xf32>
    %308 = arith.addf %300, %307 : vector<8x8x128xf32>
    %c15_i32_66 = arith.constant 15 : i32
    %309 = tpu.dynamic_rotate %301 by %c15_i32_66 dim 1 : vector<8x16x128xf32>, i32 -> vector<8x16x128xf32>
    %310 = vector.extract_strided_slice %309 {offsets = [0, 0, 0], sizes = [8, 8, 128], strides = [1, 1, 1]} : vector<8x16x128xf32> to vector<8x8x128xf32>
    %311 = vector.extract_strided_slice %17 {offsets = [36, 0], sizes = [1, 128], strides = [1, 1]} : vector<49x128xf32> to vector<1x128xf32>
    %312 = vector.shape_cast %311 : vector<1x128xf32> to vector<128xf32>
    %313 = vector.shape_cast %312 : vector<128xf32> to vector<1x1x128xf32>
    %314 = vector.broadcast %313 : vector<1x1x128xf32> to vector<8x8x128xf32>
    %315 = arith.mulf %310, %314 : vector<8x8x128xf32>
    %316 = arith.addf %308, %315 : vector<8x8x128xf32>
    %c14_i32_67 = arith.constant 14 : i32
    %317 = tpu.dynamic_rotate %301 by %c14_i32_67 dim 1 : vector<8x16x128xf32>, i32 -> vector<8x16x128xf32>
    %318 = vector.extract_strided_slice %317 {offsets = [0, 0, 0], sizes = [8, 8, 128], strides = [1, 1, 1]} : vector<8x16x128xf32> to vector<8x8x128xf32>
    %319 = vector.extract_strided_slice %17 {offsets = [37, 0], sizes = [1, 128], strides = [1, 1]} : vector<49x128xf32> to vector<1x128xf32>
    %320 = vector.shape_cast %319 : vector<1x128xf32> to vector<128xf32>
    %321 = vector.shape_cast %320 : vector<128xf32> to vector<1x1x128xf32>
    %322 = vector.broadcast %321 : vector<1x1x128xf32> to vector<8x8x128xf32>
    %323 = arith.mulf %318, %322 : vector<8x8x128xf32>
    %324 = arith.addf %316, %323 : vector<8x8x128xf32>
    %c13_i32_68 = arith.constant 13 : i32
    %325 = tpu.dynamic_rotate %301 by %c13_i32_68 dim 1 : vector<8x16x128xf32>, i32 -> vector<8x16x128xf32>
    %326 = vector.extract_strided_slice %325 {offsets = [0, 0, 0], sizes = [8, 8, 128], strides = [1, 1, 1]} : vector<8x16x128xf32> to vector<8x8x128xf32>
    %327 = vector.extract_strided_slice %17 {offsets = [38, 0], sizes = [1, 128], strides = [1, 1]} : vector<49x128xf32> to vector<1x128xf32>
    %328 = vector.shape_cast %327 : vector<1x128xf32> to vector<128xf32>
    %329 = vector.shape_cast %328 : vector<128xf32> to vector<1x1x128xf32>
    %330 = vector.broadcast %329 : vector<1x1x128xf32> to vector<8x8x128xf32>
    %331 = arith.mulf %326, %330 : vector<8x8x128xf32>
    %332 = arith.addf %324, %331 : vector<8x8x128xf32>
    %c12_i32_69 = arith.constant 12 : i32
    %333 = tpu.dynamic_rotate %301 by %c12_i32_69 dim 1 : vector<8x16x128xf32>, i32 -> vector<8x16x128xf32>
    %334 = vector.extract_strided_slice %333 {offsets = [0, 0, 0], sizes = [8, 8, 128], strides = [1, 1, 1]} : vector<8x16x128xf32> to vector<8x8x128xf32>
    %335 = vector.extract_strided_slice %17 {offsets = [39, 0], sizes = [1, 128], strides = [1, 1]} : vector<49x128xf32> to vector<1x128xf32>
    %336 = vector.shape_cast %335 : vector<1x128xf32> to vector<128xf32>
    %337 = vector.shape_cast %336 : vector<128xf32> to vector<1x1x128xf32>
    %338 = vector.broadcast %337 : vector<1x1x128xf32> to vector<8x8x128xf32>
    %339 = arith.mulf %334, %338 : vector<8x8x128xf32>
    %340 = arith.addf %332, %339 : vector<8x8x128xf32>
    %c11_i32_70 = arith.constant 11 : i32
    %341 = tpu.dynamic_rotate %301 by %c11_i32_70 dim 1 : vector<8x16x128xf32>, i32 -> vector<8x16x128xf32>
    %342 = vector.extract_strided_slice %341 {offsets = [0, 0, 0], sizes = [8, 8, 128], strides = [1, 1, 1]} : vector<8x16x128xf32> to vector<8x8x128xf32>
    %343 = vector.extract_strided_slice %17 {offsets = [40, 0], sizes = [1, 128], strides = [1, 1]} : vector<49x128xf32> to vector<1x128xf32>
    %344 = vector.shape_cast %343 : vector<1x128xf32> to vector<128xf32>
    %345 = vector.shape_cast %344 : vector<128xf32> to vector<1x1x128xf32>
    %346 = vector.broadcast %345 : vector<1x1x128xf32> to vector<8x8x128xf32>
    %347 = arith.mulf %342, %346 : vector<8x8x128xf32>
    %348 = arith.addf %340, %347 : vector<8x8x128xf32>
    %c10_i32_71 = arith.constant 10 : i32
    %349 = tpu.dynamic_rotate %301 by %c10_i32_71 dim 1 : vector<8x16x128xf32>, i32 -> vector<8x16x128xf32>
    %350 = vector.extract_strided_slice %349 {offsets = [0, 0, 0], sizes = [8, 8, 128], strides = [1, 1, 1]} : vector<8x16x128xf32> to vector<8x8x128xf32>
    %351 = vector.extract_strided_slice %17 {offsets = [41, 0], sizes = [1, 128], strides = [1, 1]} : vector<49x128xf32> to vector<1x128xf32>
    %352 = vector.shape_cast %351 : vector<1x128xf32> to vector<128xf32>
    %353 = vector.shape_cast %352 : vector<128xf32> to vector<1x1x128xf32>
    %354 = vector.broadcast %353 : vector<1x1x128xf32> to vector<8x8x128xf32>
    %355 = arith.mulf %350, %354 : vector<8x8x128xf32>
    %356 = arith.addf %348, %355 : vector<8x8x128xf32>
    %c6 = arith.constant 6 : index
    %c0_72 = arith.constant 0 : index
    %c0_73 = arith.constant 0 : index
    %357 = vector.load %arg5[%c6, %c0_72, %c0_73] : memref<14x16x128xf32, #tpu.memory_space<vmem>>, vector<8x16x128xf32>
    %358 = vector.extract_strided_slice %357 {offsets = [0, 0, 0], sizes = [8, 8, 128], strides = [1, 1, 1]} : vector<8x16x128xf32> to vector<8x8x128xf32>
    %359 = vector.extract_strided_slice %17 {offsets = [42, 0], sizes = [1, 128], strides = [1, 1]} : vector<49x128xf32> to vector<1x128xf32>
    %360 = vector.shape_cast %359 : vector<1x128xf32> to vector<128xf32>
    %361 = vector.shape_cast %360 : vector<128xf32> to vector<1x1x128xf32>
    %362 = vector.broadcast %361 : vector<1x1x128xf32> to vector<8x8x128xf32>
    %363 = arith.mulf %358, %362 : vector<8x8x128xf32>
    %364 = arith.addf %356, %363 : vector<8x8x128xf32>
    %c15_i32_74 = arith.constant 15 : i32
    %365 = tpu.dynamic_rotate %357 by %c15_i32_74 dim 1 : vector<8x16x128xf32>, i32 -> vector<8x16x128xf32>
    %366 = vector.extract_strided_slice %365 {offsets = [0, 0, 0], sizes = [8, 8, 128], strides = [1, 1, 1]} : vector<8x16x128xf32> to vector<8x8x128xf32>
    %367 = vector.extract_strided_slice %17 {offsets = [43, 0], sizes = [1, 128], strides = [1, 1]} : vector<49x128xf32> to vector<1x128xf32>
    %368 = vector.shape_cast %367 : vector<1x128xf32> to vector<128xf32>
    %369 = vector.shape_cast %368 : vector<128xf32> to vector<1x1x128xf32>
    %370 = vector.broadcast %369 : vector<1x1x128xf32> to vector<8x8x128xf32>
    %371 = arith.mulf %366, %370 : vector<8x8x128xf32>
    %372 = arith.addf %364, %371 : vector<8x8x128xf32>
    %c14_i32_75 = arith.constant 14 : i32
    %373 = tpu.dynamic_rotate %357 by %c14_i32_75 dim 1 : vector<8x16x128xf32>, i32 -> vector<8x16x128xf32>
    %374 = vector.extract_strided_slice %373 {offsets = [0, 0, 0], sizes = [8, 8, 128], strides = [1, 1, 1]} : vector<8x16x128xf32> to vector<8x8x128xf32>
    %375 = vector.extract_strided_slice %17 {offsets = [44, 0], sizes = [1, 128], strides = [1, 1]} : vector<49x128xf32> to vector<1x128xf32>
    %376 = vector.shape_cast %375 : vector<1x128xf32> to vector<128xf32>
    %377 = vector.shape_cast %376 : vector<128xf32> to vector<1x1x128xf32>
    %378 = vector.broadcast %377 : vector<1x1x128xf32> to vector<8x8x128xf32>
    %379 = arith.mulf %374, %378 : vector<8x8x128xf32>
    %380 = arith.addf %372, %379 : vector<8x8x128xf32>
    %c13_i32_76 = arith.constant 13 : i32
    %381 = tpu.dynamic_rotate %357 by %c13_i32_76 dim 1 : vector<8x16x128xf32>, i32 -> vector<8x16x128xf32>
    %382 = vector.extract_strided_slice %381 {offsets = [0, 0, 0], sizes = [8, 8, 128], strides = [1, 1, 1]} : vector<8x16x128xf32> to vector<8x8x128xf32>
    %383 = vector.extract_strided_slice %17 {offsets = [45, 0], sizes = [1, 128], strides = [1, 1]} : vector<49x128xf32> to vector<1x128xf32>
    %384 = vector.shape_cast %383 : vector<1x128xf32> to vector<128xf32>
    %385 = vector.shape_cast %384 : vector<128xf32> to vector<1x1x128xf32>
    %386 = vector.broadcast %385 : vector<1x1x128xf32> to vector<8x8x128xf32>
    %387 = arith.mulf %382, %386 : vector<8x8x128xf32>
    %388 = arith.addf %380, %387 : vector<8x8x128xf32>
    %c12_i32_77 = arith.constant 12 : i32
    %389 = tpu.dynamic_rotate %357 by %c12_i32_77 dim 1 : vector<8x16x128xf32>, i32 -> vector<8x16x128xf32>
    %390 = vector.extract_strided_slice %389 {offsets = [0, 0, 0], sizes = [8, 8, 128], strides = [1, 1, 1]} : vector<8x16x128xf32> to vector<8x8x128xf32>
    %391 = vector.extract_strided_slice %17 {offsets = [46, 0], sizes = [1, 128], strides = [1, 1]} : vector<49x128xf32> to vector<1x128xf32>
    %392 = vector.shape_cast %391 : vector<1x128xf32> to vector<128xf32>
    %393 = vector.shape_cast %392 : vector<128xf32> to vector<1x1x128xf32>
    %394 = vector.broadcast %393 : vector<1x1x128xf32> to vector<8x8x128xf32>
    %395 = arith.mulf %390, %394 : vector<8x8x128xf32>
    %396 = arith.addf %388, %395 : vector<8x8x128xf32>
    %c11_i32_78 = arith.constant 11 : i32
    %397 = tpu.dynamic_rotate %357 by %c11_i32_78 dim 1 : vector<8x16x128xf32>, i32 -> vector<8x16x128xf32>
    %398 = vector.extract_strided_slice %397 {offsets = [0, 0, 0], sizes = [8, 8, 128], strides = [1, 1, 1]} : vector<8x16x128xf32> to vector<8x8x128xf32>
    %399 = vector.extract_strided_slice %17 {offsets = [47, 0], sizes = [1, 128], strides = [1, 1]} : vector<49x128xf32> to vector<1x128xf32>
    %400 = vector.shape_cast %399 : vector<1x128xf32> to vector<128xf32>
    %401 = vector.shape_cast %400 : vector<128xf32> to vector<1x1x128xf32>
    %402 = vector.broadcast %401 : vector<1x1x128xf32> to vector<8x8x128xf32>
    %403 = arith.mulf %398, %402 : vector<8x8x128xf32>
    %404 = arith.addf %396, %403 : vector<8x8x128xf32>
    %c10_i32_79 = arith.constant 10 : i32
    %405 = tpu.dynamic_rotate %357 by %c10_i32_79 dim 1 : vector<8x16x128xf32>, i32 -> vector<8x16x128xf32>
    %406 = vector.extract_strided_slice %405 {offsets = [0, 0, 0], sizes = [8, 8, 128], strides = [1, 1, 1]} : vector<8x16x128xf32> to vector<8x8x128xf32>
    %407 = vector.extract_strided_slice %17 {offsets = [48, 0], sizes = [1, 128], strides = [1, 1]} : vector<49x128xf32> to vector<1x128xf32>
    %408 = vector.shape_cast %407 : vector<1x128xf32> to vector<128xf32>
    %409 = vector.shape_cast %408 : vector<128xf32> to vector<1x1x128xf32>
    %410 = vector.broadcast %409 : vector<1x1x128xf32> to vector<8x8x128xf32>
    %411 = arith.mulf %406, %410 : vector<8x8x128xf32>
    %412 = arith.addf %404, %411 : vector<8x8x128xf32>
    %413 = vector.shape_cast %412 : vector<8x8x128xf32> to vector<64x128xf32>
    %c0_80 = arith.constant 0 : index
    %c1_81 = arith.constant 1 : index
    %c0_82 = arith.constant 0 : index
    %414 = vector.load %arg4[%c0_80, %c1_81, %c0_82] : memref<1x65x128xf32, #tpu.memory_space<vmem>>, vector<1x64x128xf32>
    %415 = vector.shape_cast %414 : vector<1x64x128xf32> to vector<64x128xf32>
    %416 = vector.shape_cast %413 : vector<64x128xf32> to vector<1x64x128xf32>
    tpu.vector_store %arg4[%c0_80, %c1_81, %c0_82], %416 {strides = array<i32>} : memref<1x65x128xf32, #tpu.memory_space<vmem>>, vector<1x64x128xf32>,
    return
  }
  func.func @transform_0(%arg0: i32) -> (i32, i32, i32) {
    %c0_i32 = arith.constant 0 : i32
    %c0_i32_0 = arith.constant 0 : i32
    %c0_i32_1 = arith.constant 0 : i32
    return %arg0, %c0_i32, %c0_i32_0 : i32, i32, i32
  }
  func.func @transform_1(%arg0: i32) -> (i32, i32) {
    %c0_i32 = arith.constant 0 : i32
    %c0_i32_0 = arith.constant 0 : i32
    %c0_i32_1 = arith.constant 0 : i32
    return %c0_i32, %c0_i32_0 : i32, i32
  }
  func.func @transform_2(%arg0: i32) -> (i32, i32) {
    %c0_i32 = arith.constant 0 : i32
    %c0_i32_0 = arith.constant 0 : i32
    %c0_i32_1 = arith.constant 0 : i32
    return %c0_i32, %c0_i32_0 : i32, i32
  }
  func.func @transform_3(%arg0: i32) -> (i32, i32, i32) {
    %c0_i32 = arith.constant 0 : i32
    %c0_i32_0 = arith.constant 0 : i32
    %c0_i32_1 = arith.constant 0 : i32
    return %arg0, %c0_i32, %c0_i32_0 : i32, i32, i32
  }
}

</mosaic_0001>

<bundles_post_ra>
// kernel: tpu_custom_call.1
= control target key start
LH: loop header
LB: loop body
LE: loop exit
PB: predicated region body
PF: predicated region fallthrough
CT: control target
= control target key end

     0   :  { %s2461_s12 = smov 0   ;;  %s3798_s0 = inlined_call_operand.vmem [shape: f32[2,65,128], index: 0, kind: input, shape index: {}, may-alias: {0,3}]   ;;  %s3799_s1 = inlined_call_operand.vmem [shape: f32[49,128], index: 1, kind: input, shape index: {}]   ;;  %s3800_s2 = inlined_call_operand.vmem [shape: f32[1,128], index: 2, kind: input, shape index: {}]   ;;  %s3801_s3 = inlined_call_operand.vmem [shape: f32[2,65,128], index: 3, kind: output, shape index: {}, may-alias: {0,3}]  }
   0x1 LB: > { %s2409_s13 = sadd.s32 4294967295, %s2438_s12   ;;  %p2413_p0 = scmp.ge.s32.totalorder %s2438_s12, 1  ;;  %s2438_s12 = sphi %s2461_s12, %s13_s12  }
   0x2   : > { %p137_p1 = scmp.lt.s32.totalorder %s2438_s12, 3 }
   0x4   : > { %p138_p2 = pnand %p2413_p0, %p137_p1 }
   0x6   : > { %141 = sbr.rel (%p138_p2) target bundleno = 286 (0x11e), region = 32 }
   0xd   : > { %v249_v0 = vlaneseq  ;;  %p2469_p3 = scmp.lt.s32.totalorder %s2409_s13, 1  ;;  %v2440_v1 = vmov 0.0   ;;  %v219_v4 = vld [vmem:[%s3799_s1] sm:$0xff]  ;;  %v220_v32 = vld [vmem:[%s3799_s1 + $0x8] sm:$0xff] }
   0xe   : > { %181 = vst [vmem:[#allocation2] sm:$0xff] %v2440_v1  ;;  %v2473_v2 = vrot.slane %v2440_v1, 1  ;;  %195 = vst [vmem:[#allocation2 + $0x30] sm:$0x7] %v2440_v1  ;;  %v2482_v5 = vrot.slane %v2440_v1, 2  ;;  %v2484_v6 = vrot.slane %v2440_v1, 3 }
   0xf   : > { %196 = vst [vmem:[#allocation2 + $0x40] sm:$0x7] %v2440_v1  ;;  %197 = vst [vmem:[#allocation2 + $0x50] sm:$0x7] %v2440_v1  ;;  %v2475_v3 = vshrl.u32 %v249_v0, 7  ;;  %s4057_s13 = smov (!%p2469_p3, %s2409_s13), 1 }
  0x10   : > { %3911 = vst [vmem:[#allocation3_spill] sm:$0xff] %v2473_v2  ;;  %198 = vst [vmem:[#allocation2 + $0x60] sm:$0x7] %v2440_v1  ;;  %s2420_s17 = smul.u32 72, %s4057_s13  ;;  %v2501_v11 = vrot.slane %v2440_v1, 4  ;;  %v2539_v21 = vrot.slane %v2440_v1, 5 }
  0x11   : > { %199 = vst [vmem:[#allocation2 + $0x70] sm:$0x7] %v2440_v1  ;;  %200 = vst [vmem:[#allocation2 + $0x80] sm:$0x7] %v2440_v1  ;;  %v2487_v7 = vsub.s32 0, %v2475_v3  ;;  %vm287_vm0 = vcmp.lt.s32.totalorder %v2475_v3, 7 }
  0x12   : > { %201 = vst [vmem:[#allocation2 + $0x90] sm:$0x7] %v2440_v1  ;;  %202 = vst [vmem:[#allocation2 + $0xa0] sm:$0x7] %v2440_v1  ;;  %v2491_v8 = vsub.s32 1, %v2475_v3  ;;  %vm332_vm1 = vcmp.lt.s32.totalorder %v2475_v3, 6  ;;  %s2512_s20 = scalar_lea.vmem %s3798_s0, %s2420_s17  ;;  %s2517_s23 = scalar_lea.vmem %s3801_s3, %s2420_s17 }
  0x13   : > { %203 = vst [vmem:[#allocation2 + $0x3b] sm:$0x1f] %v2440_v1  ;;  %204 = vst [vmem:[#allocation2 + $0x4b] sm:$0x1f] %v2440_v1  ;;  %v2495_v9 = vsub.s32 2, %v2475_v3  ;;  %vm377_vm2 = vcmp.lt.s32.totalorder %v2475_v3, 5  ;;  %v2499_v10 = vrot.slane %v219_v4, %v2487_v7  ;;  %v2586_v46 = vrot.slane %v220_v32, %v2487_v7 }
  0x14   : > { %205 = vst [vmem:[#allocation2 + $0x5b] sm:$0x1f] %v2440_v1  ;;  %206 = vst [vmem:[#allocation2 + $0x6b] sm:$0x1f] %v2440_v1  ;;  %v2504_v12 = vrot.slane %v219_v4, %v2491_v8  ;;  %v2507_v13 = vsub.s32 3, %v2475_v3  ;;  %v2528_v16 = vsub.s32 4, %v2475_v3  ;;  %v2589_v47 = vrot.slane %v220_v32, %v2491_v8 }
  0x15   : > { %207 = vst [vmem:[#allocation2 + $0x7b] sm:$0x1f] %v2440_v1  ;;  %208 = vst [vmem:[#allocation2 + $0x8b] sm:$0x1f] %v2440_v1  ;;  %v2522_v14 = vld [vmem:[%s3800_s2] ss:$0 sm:$0xff]  ;;  %v2525_v15 = vrot.slane %v219_v4, %v2495_v9  ;;  %v2593_v50 = vrot.slane %v220_v32, %v2495_v9  ;;  %v606_v52 = vmul.f32 %v2586_v46, %v2473_v2 }
  0x16   : > { %209 = vst [vmem:[#allocation2 + $0x9b] sm:$0x1f] %v2440_v1  ;;  %210 = vst [vmem:[#allocation2 + $0xab] sm:$0x1f] %v2440_v1  ;;  %v171_v17 = vld [vmem:[%s2512_s20] sm:$0x1]  ;;  %v300_v19 = vmul.f32 %v2504_v12, %v2473_v2  ;;  %v2535_v20 = vrot.slane %v219_v4, %v2507_v13  ;;  %v2549_v25 = vrot.slane %v219_v4, %v2528_v16 }
  0x17   : > { %3912 = vst [vmem:[#allocation4_spill] sm:$0xff] %v2482_v5  ;;  %3913 = vst [vmem:[#allocation5_spill] sm:$0xff] %v2484_v6  ;;  %v253_v18 = vmul.f32 0.0, %v2499_v10  ;;  %vm422_vm3 = vcmp.lt.s32.totalorder %v2475_v3, 4  ;;  %vm467_vm4 = vcmp.lt.s32.totalorder %v2475_v3, 3  ;;  %v2543_v22 = vsub.s32 5, %v2475_v3 }
  0x18   : > { %3914 = vst [vmem:[#allocation6_spill] sm:$0xff] %v2487_v7  ;;  %3915 = vst [vmem:[#allocation7_spill] sm:$0xff] %v2491_v8  ;;  %v345_v24 = vmul.f32 %v2525_v15, %v2482_v5  ;;  %v2552_v26 = vsub.s32 6, %v2475_v3  ;;  %v2554_v27 = vrot.slane %v2440_v1, 6  ;;  %v390_v28 = vmul.f32 %v2535_v20, %v2484_v6 }
  0x19   : > { %3916 = vst [vmem:[#allocation8_spill] sm:$0xff] %v2495_v9  ;;  %3917 = vst [vmem:[#allocation9_spill] sm:$0xff] %v2499_v10  ;;  %v261_v23 = vadd.f32 %v2522_v14, %v253_v18  ;;  %v2559_v30 = vrot.slane %v219_v4, %v2543_v22  ;;  %vm512_vm5 = vcmp.lt.s32.totalorder %v2475_v3, 2  ;;  %v2563_v31 = vsub.s32 7, %v2475_v3 }
  0x1a   : > { %3918 = vst [vmem:[#allocation10_spill] sm:$0xff] %v2501_v11  ;;  %3919 = vst [vmem:[#allocation11_spill] sm:$0xff] %v2504_v12  ;;  %v435_v34 = vmul.f32 %v2549_v25, %v2501_v11  ;;  %v2571_v35 = vrot.slane %v219_v4, %v2552_v26  ;;  %v650_v53 = vmul.f32 %v2589_v47, %v2482_v5 }
  0x1b   : > { %3920 = vst [vmem:[#allocation12_spill] sm:$0xff] %v2507_v13  ;;  %3921 = vst [vmem:[#allocation13_spill] sm:$0xff] %v2522_v14  ;;  %v308_v29 = vadd.f32 %v300_v19, %v261_v23  ;;  %v480_v40 = vmul.f32 %v2559_v30, %v2539_v21  ;;  %v2579_v41 = vrot.slane %v219_v4, %v2563_v31 }
  0x1c   : > { %3922 = vst [vmem:[#allocation14_spill] sm:$0xff] %v2525_v15  ;;  %3923 = vst [vmem:[#allocation15_spill] sm:$0xff] %v2528_v16  ;;  %v525_v45 = vmul.f32 %v2571_v35, %v2554_v27  ;;  %v694_v60 = vmul.f32 %v2593_v50, %v2484_v6  ;;  %v2610_v61 = vrot.slane %v220_v32, %v2507_v13 }
  0x1d   : > { %172 = vst [vmem:[%s2517_s23] sm:$0x1] %v171_v17  ;;  %3924 = vst [vmem:[#allocation16_spill] sm:$0xff] %v2539_v21  ;;  %v353_v33 = vadd.f32 %v345_v24, %v308_v29  ;;  %v562_v49 = vmul.f32 0.0, %v2579_v41  ;;  %v2622_v18 = vrot.slane %v220_v32, %v2528_v16 }
  0x1e   : > { %3925 = vst [vmem:[#allocation17_spill] sm:$0xff] %v2543_v22  ;;  %3926 = vst [vmem:[#allocation18_spill] sm:$0xff] %v2552_v26  ;;  %v738_v17 = vmul.f32 %v2610_v61, %v2501_v11 }
  0x1f   : > { %3927 = vst [vmem:[#allocation19_spill] sm:$0xff] %v2554_v27  ;;  %3928 = vst [vmem:[#allocation20_spill] sm:$0xff] %v2563_v31  ;;  %v398_v39 = vadd.f32 %v390_v28, %v353_v33  ;;  %v2628_v28 = vrot.slane %v220_v32, %v2543_v22  ;;  %v782_v29 = vmul.f32 %v2622_v18, %v2539_v21 }
  0x20   : > { %3929 = vst [vmem:[#allocation21_spill] sm:$0xff] %v2571_v35  ;;  %3930 = vst [vmem:[#allocation22_spill] sm:$0xff] %v2579_v41  ;;  %v2633_v33 = vrot.slane %v220_v32, %v2552_v26 }
  0x21   : > { %v443_v44 = vadd.f32 %v435_v34, %v398_v39  ;;  %v826_v39 = vmul.f32 %v2628_v28, %v2554_v27 }
  0x23   : > { %v488_v48 = vadd.f32 %v480_v40, %v443_v44  ;;  %v2644_v40 = vrot.slane %v220_v32, %v2563_v31 }
  0x24   : > { %v173_v36 = vld [vmem:[%s2512_s20 + $0x1] sm:$0xff]  ;;  %v174_v37 = vld [vmem:[%s2512_s20 + $0x9] sm:$0xff]  ;;  %v175_v38 = vld [vmem:[%s2512_s20 + $0x11] sm:$0xff] }
  0x25   : > { %211 = vst [vmem:[#allocation2 + $0x33] sm:$0xff] %v173_v36  ;;  %212 = vst [vmem:[#allocation2 + $0x43] sm:$0xff] %v174_v37  ;;  %v176_v42 = vld [vmem:[%s2512_s20 + $0x19] sm:$0xff]  ;;  %v177_v43 = vld [vmem:[%s2512_s20 + $0x21] sm:$0xff]  ;;  %v533_v51 = vadd.f32 %v525_v45, %v488_v48  ;;  %v863_v45 = vmul.f32 0.0, %v2633_v33 }
  0x26   : > { %213 = vst [vmem:[#allocation2 + $0x53] sm:$0xff] %v175_v38  ;;  %214 = vst [vmem:[#allocation2 + $0x63] sm:$0xff] %v176_v42  ;;  %v178_v4 = vld [vmem:[%s2512_s20 + $0x29] sm:$0xff] }
  0x27   : > { %215 = vst [vmem:[#allocation2 + $0x73] sm:$0xff] %v177_v43  ;;  %v570_v56 = vadd.f32 %v562_v49, %v533_v51  ;;  %216 = vst [vmem:[#allocation2 + $0x83] sm:$0xff] %v178_v4 }
  0x29   : > { %v614_v63 = vadd.f32 %v606_v52, %v570_v56  ;;  %v221_v56 = vld [vmem:[%s3799_s1 + $0x10] sm:$0xff] }
  0x2b   : > { %v658_v24 = vadd.f32 %v650_v53, %v614_v63  ;;  %v2668_v63 = vrot.slane %v221_v56, %v2491_v8 }
  0x2c   : > { %v2599_v54 = vld [vmem:[#allocation2 + $0x30] sm:$0xff]  ;;  %v2601_v55 = vld [vmem:[#allocation2 + $0x38] sm:$0xff] }
  0x2d   : > { %v256_v57 = vmul.f32 %v2499_v10, %v2599_v54  ;;  %v272_v58 = vrot.slane %v2599_v54, 1  ;;  %v280_v59 = vrot.slane %v2601_v55, 1  ;;  %v319_v62 = vrot.slane %v2599_v54, 2  ;;  %3932 = vst [vmem:[#allocation24_spill] sm:$0xff] %v2668_v63 }
  0x2e   : > { %v327_v1 = vrot.slane %v2601_v55, 2  ;;  %v364_v34 = vrot.slane %v2599_v54, 3  ;;  %v372_v36 = vrot.slane %v2601_v55, 3  ;;  %v702_v37 = vadd.f32 %v694_v60, %v658_v24 }
  0x2f   : > { %v2615_v0 = vsel %vm287_vm0, %v272_v58, %v280_v59  ;;  %v264_v19 = vadd.f32 %v2522_v14, %v256_v57  ;;  %v564_v43 = vmul.f32 %v2579_v41, %v2599_v54  ;;  %v409_v57 = vrot.slane %v2599_v54, 4 }
  0x30   : > { %v303_v23 = vmul.f32 %v2504_v12, %v2615_v0  ;;  %v2639_v38 = vsel %vm332_vm1, %v319_v62, %v327_v1  ;;  %v746_v44 = vadd.f32 %v738_v17, %v702_v37  ;;  %v2653_v49 = vsel %vm377_vm2, %v364_v34, %v372_v36 }
  0x31   : > { %v348_v48 = vmul.f32 %v2525_v15, %v2639_v38  ;;  %v572_v52 = vadd.f32 %v564_v43, %v533_v51  ;;  %v608_v53 = vmul.f32 %v2586_v46, %v2615_v0  ;;  %v417_v58 = vrot.slane %v2601_v55, 4 }
  0x32   : > { %v311_v42 = vadd.f32 %v303_v23, %v264_v19  ;;  %v790_v32 = vadd.f32 %v782_v29, %v746_v44  ;;  %v2663_v59 = vrot.slane %v221_v56, %v2487_v7  ;;  %v907_v51 = vmul.f32 %v2644_v40, %v2473_v2 }
  0x33   : > { %v393_v4 = vmul.f32 %v2535_v20, %v2653_v49  ;;  %v616_v17 = vadd.f32 %v608_v53, %v572_v52  ;;  %v864_v19 = vmul.f32 %v2633_v33, %v2599_v54  ;;  %v2678_v24 = vsel %vm422_vm3, %v409_v57, %v417_v58 }
  0x34   : > { %3931 = vst [vmem:[#allocation23_spill] sm:$0xff] %v2663_v59  ;;  %v356_v60 = vadd.f32 %v348_v48, %v311_v42  ;;  %v834_v62 = vadd.f32 %v826_v39, %v790_v32  ;;  %v951_v1 = vmul.f32 %v2663_v59, %v2482_v5  ;;  %v454_v29 = vrot.slane %v2599_v54, 5 }
  0x35   : > { %v462_v34 = vrot.slane %v2601_v55, 5  ;;  %v2683_v36 = vrot.slane %v221_v56, %v2495_v9  ;;  %v652_v39 = vmul.f32 %v2589_v47, %v2639_v38  ;;  %v995_v44 = vmul.f32 %v2668_v63, %v2484_v6 }
  0x36   : > { %v871_v23 = vadd.f32 %v863_v45, %v834_v62  ;;  %v401_v37 = vadd.f32 %v393_v4, %v356_v60  ;;  %v872_v42 = vadd.f32 %v864_v19, %v834_v62  ;;  %v908_v45 = vmul.f32 %v2644_v40, %v2615_v0 }
  0x37   : > { %3933 = vst [vmem:[#allocation25_spill] sm:$0xff] %v2683_v36  ;;  %v1039_v48 = vmul.f32 %v2683_v36, %v2501_v11  ;;  %v438_v52 = vmul.f32 %v2549_v25, %v2678_v24  ;;  %v660_v53 = vadd.f32 %v652_v39, %v616_v17  ;;  %v2696_v57 = vrot.slane %v221_v56, %v2507_v13  ;;  %v2715_v39 = vld [vmem:[#allocation2 + $0x40] sm:$0xff] }
  0x38   : > { %v915_v43 = vadd.f32 %v907_v51, %v871_v23  ;;  %v2700_v58 = vsel %vm467_vm4, %v454_v29, %v462_v34  ;;  %v916_v60 = vadd.f32 %v908_v45, %v872_v42  ;;  %v499_v51 = vrot.slane %v2599_v54, 6 }
  0x39   : > { %3934 = vst [vmem:[#allocation26_spill] sm:$0xff] %v2696_v57  ;;  %v446_v62 = vadd.f32 %v438_v52, %v401_v37  ;;  %v507_v4 = vrot.slane %v2601_v55, 6  ;;  %v696_v19 = vmul.f32 %v2593_v50, %v2653_v49  ;;  %v2709_v17 = vrot.slane %v221_v56, %v2528_v16  ;;  %v2717_v55 = vld [vmem:[#allocation2 + $0x48] sm:$0xff] }
  0x3a   : > { %v959_v32 = vadd.f32 %v951_v1, %v915_v43  ;;  %v1083_v1 = vmul.f32 %v2696_v57, %v2539_v21  ;;  %v952_v29 = vmul.f32 %v2663_v59, %v2639_v38  ;;  %v483_v34 = vmul.f32 %v2559_v30, %v2700_v58 }
  0x3b   : > { %3935 = vst [vmem:[#allocation27_spill] sm:$0xff] %v2709_v17  ;;  %v704_v37 = vadd.f32 %v696_v19, %v660_v53  ;;  %v1127_v43 = vmul.f32 %v2709_v17, %v2554_v27  ;;  %v2722_v45 = vrot.slane %v221_v56, %v2543_v22  ;;  %v740_v53 = vmul.f32 %v2610_v61, %v2678_v24 }
  0x3c   : > { %v1003_v23 = vadd.f32 %v995_v44, %v959_v32  ;;  %v960_v44 = vadd.f32 %v952_v29, %v916_v60  ;;  %v491_v52 = vadd.f32 %v483_v34, %v446_v62  ;;  %v516_v32 = vsel %vm512_vm5, %v499_v51, %v507_v4 }
  0x3d   : > { %3936 = vst [vmem:[#allocation28_spill] sm:$0xff] %v2722_v45  ;;  %v2729_v19 = vrot.slane %v221_v56, %v2552_v26  ;;  %v996_v60 = vmul.f32 %v2668_v63, %v2653_v49  ;;  %v273_v62 = vrot.slane %v2715_v39, 1  ;;  %v748_v51 = vadd.f32 %v740_v53, %v704_v37 }
  0x3e   : > { %v1047_v42 = vadd.f32 %v1039_v48, %v1003_v23  ;;  %v2734_v48 = vld [vmem:[%s3799_s1 + $0x18] sm:$0xff]  ;;  %v281_v23 = vrot.slane %v2717_v55, 1  ;;  %v2741_v4 = vrot.slane %v221_v56, %v2563_v31  ;;  %v528_v34 = vmul.f32 %v2571_v35, %v516_v32 }
  0x3f   : > { %3937 = vst [vmem:[#allocation29_spill] sm:$0xff] %v2729_v19  ;;  %v2745_v29 = vrot.slane %v2734_v48, %v2487_v7  ;;  %v1163_v11 = vmul.f32 %v2722_v45, %v2599_v54  ;;  %v784_v6 = vmul.f32 %v2622_v18, %v2700_v58  ;;  %v1040_v56 = vmul.f32 %v2683_v36, %v2678_v24 }
  0x40   : > { %v1091_v21 = vadd.f32 %v1083_v1, %v1047_v42  ;;  %3938 = vst [vmem:[#allocation30_spill] sm:$0xff] %v2741_v4  ;;  %v179_v1 = vld [vmem:[%s2512_s20 + $0x31] sm:$0xff]  ;;  %v1004_v42 = vadd.f32 %v996_v60, %v960_v44  ;;  %v2757_v37 = vrot.slane %v2734_v48, %v2491_v8  ;;  %v257_v53 = vmul.f32 %v2499_v10, %v2715_v39 }
  0x41   : > { %3939 = vst [vmem:[#allocation31_spill] sm:$0xff] %v2745_v29  ;;  %217 = vst [vmem:[#allocation2 + $0x93] sm:$0xff] %v179_v1  ;;  %v2765_v54 = vsel %vm287_vm0, %v273_v62, %v281_v23  ;;  %v792_v44 = vadd.f32 %v784_v6, %v748_v51  ;;  %v828_v60 = vmul.f32 %v2628_v28, %v516_v32  ;;  %v320_v2 = vrot.slane %v2715_v39, 2 }
  0x42   : > { %v1135_v27 = vadd.f32 %v1127_v43, %v1091_v21  ;;  %3940 = vst [vmem:[#allocation32_spill] sm:$0xff] %v2757_v37  ;;  %v1207_v21 = vmul.f32 %v2729_v19, %v2615_v0  ;;  %v536_v43 = vadd.f32 %v528_v34, %v491_v52  ;;  %v1251_v1 = vmul.f32 %v2741_v4, %v2639_v38 }
  0x43   : > { %v1048_v8 = vadd.f32 %v1040_v56, %v1004_v42  ;;  %v1084_v0 = vmul.f32 %v2696_v57, %v2700_v58  ;;  %v1295_v6 = vmul.f32 %v2745_v29, %v2653_v49  ;;  %v265_v52 = vadd.f32 %v2522_v14, %v257_v53 }
  0x44   : > { %v1171_v5 = vadd.f32 %v1163_v11, %v1135_v27  ;;  %v328_v11 = vrot.slane %v2717_v55, 2  ;;  %v565_v27 = vmul.f32 %v2579_v41, %v2715_v39  ;;  %v304_v38 = vmul.f32 %v2504_v12, %v2765_v54 }
  0x45   : > { %v2785_v23 = vrot.slane %v2734_v48, %v2495_v9  ;;  %v2789_v34 = vrot.slane %v2734_v48, %v2507_v13  ;;  %v365_v49 = vrot.slane %v2715_v39, 3  ;;  %v373_v42 = vrot.slane %v2717_v55, 3 }
  0x46   : > { %v1215_v35 = vadd.f32 %v1207_v21, %v1171_v5  ;;  %v1339_v5 = vmul.f32 %v2757_v37, %v2678_v24  ;;  %v573_v51 = vadd.f32 %v565_v27, %v536_v43  ;;  %v836_v56 = vadd.f32 %v828_v60, %v792_v44 }
  0x47   : > { %3941 = vst [vmem:[#allocation33_spill] sm:$0xff] %v2785_v23  ;;  %3942 = vst [vmem:[#allocation34_spill] sm:$0xff] %v2789_v34  ;;  %v1092_v53 = vadd.f32 %v1084_v0, %v1048_v8  ;;  %v609_v24 = vmul.f32 %v2586_v46, %v2765_v54  ;;  %v312_v43 = vadd.f32 %v304_v38, %v265_v52  ;;  %v410_v44 = vrot.slane %v2715_v39, 4 }
  0x48   : > { %v1259_v62 = vadd.f32 %v1251_v1, %v1215_v35  ;;  %v337_v35 = vsel %vm332_vm1, %v320_v2, %v328_v11  ;;  %v1128_v1 = vmul.f32 %v2709_v17, %v516_v32  ;;  %v865_v27 = vmul.f32 %v2633_v33, %v2715_v39 }
  0x49   : > { %v1383_v9 = vmul.f32 %v2785_v23, %v2700_v58  ;;  %v617_v8 = vadd.f32 %v609_v24, %v573_v51  ;;  %v349_v60 = vmul.f32 %v2525_v15, %v337_v35  ;;  %v2806_v2 = vsel %vm377_vm2, %v365_v49, %v373_v42 }
  0x4a   : > { %v1303_v21 = vadd.f32 %v1295_v6, %v1259_v62  ;;  %v418_v11 = vrot.slane %v2717_v55, 4  ;;  %v873_v0 = vadd.f32 %v865_v27, %v836_v56  ;;  %v1427_v52 = vmul.f32 %v2789_v34, %v516_v32 }
  0x4b   : > { %v653_v38 = vmul.f32 %v2589_v47, %v337_v35  ;;  %v1136_v62 = vadd.f32 %v1128_v1, %v1092_v53  ;;  %v909_v58 = vmul.f32 %v2644_v40, %v2765_v54  ;;  %v2815_v51 = vrot.slane %v2734_v48, %v2528_v16 }
  0x4c   : > { %v1347_v13 = vadd.f32 %v1339_v5, %v1303_v21  ;;  %v357_v5 = vadd.f32 %v349_v60, %v312_v43  ;;  %v394_v49 = vmul.f32 %v2535_v20, %v2806_v2  ;;  %v2823_v32 = vsel %vm422_vm3, %v410_v44, %v418_v11 }
  0x4d   : > { %3943 = vst [vmem:[#allocation35_spill] sm:$0xff] %v2815_v51  ;;  %v661_v42 = vadd.f32 %v653_v38, %v617_v8  ;;  %v455_v56 = vrot.slane %v2715_v39, 5  ;;  %v463_v53 = vrot.slane %v2717_v55, 5  ;;  %v917_v21 = vadd.f32 %v909_v58, %v873_v0  ;;  %v2847_v58 = vld [vmem:[#allocation2 + $0x58] sm:$0xff] }
  0x4e   : > { %v1391_v6 = vadd.f32 %v1383_v9, %v1347_v13  ;;  %v1164_v9 = vmul.f32 %v2722_v45, %v2715_v39  ;;  %v697_v24 = vmul.f32 %v2593_v50, %v2806_v2  ;;  %v1464_v43 = vmul.f32 %v2815_v51, %v2715_v39 }
  0x4f   : > { %v2833_v27 = vrot.slane %v2734_v48, %v2543_v22  ;;  %v402_v8 = vadd.f32 %v394_v49, %v357_v5  ;;  %v953_v44 = vmul.f32 %v2663_v59, %v337_v35  ;;  %v1208_v11 = vmul.f32 %v2729_v19, %v2765_v54 }
  0x50   : > { %v1435_v13 = vadd.f32 %v1427_v52, %v1391_v6  ;;  %v1172_v1 = vadd.f32 %v1164_v9, %v1136_v62  ;;  %v705_v60 = vadd.f32 %v697_v24, %v661_v42  ;;  %v2838_v6 = vld [vmem:[#allocation2 + $0x50] sm:$0xff]  ;;  %v439_v52 = vmul.f32 %v2549_v25, %v2823_v32 }
  0x51   : > { %3944 = vst [vmem:[#allocation36_spill] sm:$0xff] %v2833_v27  ;;  %v2844_v38 = vsel %vm467_vm4, %v455_v56, %v463_v53  ;;  %v500_v62 = vrot.slane %v2715_v39, 6  ;;  %v961_v5 = vadd.f32 %v953_v44, %v917_v21  ;;  %v741_v49 = vmul.f32 %v2610_v61, %v2823_v32  ;;  %v180_v21 = vld [vmem:[%s2512_s20 + $0x39] sm:$0xff] }
  0x52   : > { %v1472_v0 = vadd.f32 %v1464_v43, %v1435_v13  ;;  %v1216_v42 = vadd.f32 %v1208_v11, %v1172_v1  ;;  %v1508_v9 = vmul.f32 %v2833_v27, %v2765_v54  ;;  %v2855_v13 = vrot.slane %v2734_v48, %v2552_v26  ;;  %218 = vst [vmem:[#allocation2 + $0xa3] sm:$0xff] %v180_v21 }
  0x53   : > { %v447_v24 = vadd.f32 %v439_v52, %v402_v8  ;;  %v508_v56 = vrot.slane %v2717_v55, 6  ;;  %v997_v39 = vmul.f32 %v2668_v63, %v2806_v2  ;;  %v274_v53 = vrot.slane %v2838_v6, 1 }
  0x54   : > { %3945 = vst [vmem:[#allocation37_spill] sm:$0xff] %v2855_v13  ;;  %v749_v43 = vadd.f32 %v741_v49, %v705_v60  ;;  %v1252_v44 = vmul.f32 %v2741_v4, %v337_v35  ;;  %v1516_v1 = vadd.f32 %v1508_v9, %v1472_v0  ;;  %v282_v11 = vrot.slane %v2847_v58, 1 }
  0x55   : > { %v484_v54 = vmul.f32 %v2559_v30, %v2844_v38  ;;  %v785_v8 = vmul.f32 %v2622_v18, %v2844_v38  ;;  %v1005_v55 = vadd.f32 %v997_v39, %v961_v5  ;;  %v1552_v26 = vmul.f32 %v2855_v13, %v337_v35  ;;  %v2888_v35 = vld [vmem:[%s3799_s1 + $0x20] sm:$0xff] }
  0x56   : > { %v1260_v52 = vadd.f32 %v1252_v44, %v1216_v42  ;;  %v2871_v22 = vrot.slane %v2734_v48, %v2563_v31  ;;  %v258_v60 = vmul.f32 %v2499_v10, %v2838_v6  ;;  %v2877_v0 = vsel %vm512_vm5, %v500_v62, %v508_v56 }
  0x57   : > { %v1041_v49 = vmul.f32 %v2683_v36, %v2823_v32  ;;  %v2883_v5 = vsel %vm287_vm0, %v274_v53, %v282_v11  ;;  %v492_v48 = vadd.f32 %v484_v54, %v447_v24  ;;  %v793_v42 = vadd.f32 %v785_v8, %v749_v43 }
  0x58   : > { %3946 = vst [vmem:[#allocation38_spill] sm:$0xff] %v2871_v22  ;;  %v1296_v9 = vmul.f32 %v2745_v29, %v2806_v2  ;;  %v1560_v39 = vadd.f32 %v1552_v26, %v1516_v1  ;;  %v2894_v56 = vrot.slane %v2888_v35, %v2487_v7  ;;  %v321_v21 = vrot.slane %v2838_v6, 2  ;;  %v3948_v26 = vld [vmem:[#allocation21_spill] sm:$0xff]  ;;  %v3949_v7 = vld [vmem:[#allocation7_spill] sm:$0xff] }
  0x59   : > { %v1049_v62 = vadd.f32 %v1041_v49, %v1005_v55  ;;  %v329_v53 = vrot.slane %v2847_v58, 2  ;;  %v1596_v11 = vmul.f32 %v2871_v22, %v2806_v2  ;;  %v266_v24 = vadd.f32 %v2522_v14, %v258_v60 }
  0x5a   : > { %3947 = vst [vmem:[#allocation39_spill] sm:$0xff] %v2894_v56  ;;  %v1304_v44 = vadd.f32 %v1296_v9, %v1260_v52  ;;  %v305_v43 = vmul.f32 %v2504_v12, %v2883_v5  ;;  %v529_v1 = vmul.f32 %v3948_v26, %v2877_v0  ;;  %v829_v54 = vmul.f32 %v2628_v28, %v2877_v0 }
  0x5b   : > { %v1085_v8 = vmul.f32 %v2696_v57, %v2844_v38  ;;  %v1340_v55 = vmul.f32 %v2757_v37, %v2823_v32  ;;  %v1384_v2 = vmul.f32 %v2785_v23, %v2844_v38  ;;  %v1604_v52 = vadd.f32 %v1596_v11, %v1560_v39 }
  0x5c   : > { %v366_v60 = vrot.slane %v2838_v6, 3  ;;  %v374_v49 = vrot.slane %v2847_v58, 3  ;;  %v1640_v9 = vmul.f32 %v2894_v56, %v2823_v32  ;;  %v2919_v12 = vrot.slane %v2888_v35, %v3949_v7 }
  0x5d   : > { %v2923_v22 = vsel %vm332_vm1, %v321_v21, %v329_v53  ;;  %v537_v14 = vadd.f32 %v529_v1, %v492_v48  ;;  %v1093_v31 = vadd.f32 %v1085_v8, %v1049_v62  ;;  %v1348_v10 = vadd.f32 %v1340_v55, %v1304_v44  ;;  %v3951_v55 = vld [vmem:[#allocation8_spill] sm:$0xff] }
  0x5e   : > { %3950 = vst [vmem:[#allocation21_spill] sm:$0xff] %v2919_v12  ;;  %v313_v13 = vadd.f32 %v305_v43, %v266_v24  ;;  %v837_v39 = vadd.f32 %v829_v54, %v793_v42  ;;  %v411_v11 = vrot.slane %v2838_v6, 4  ;;  %v419_v23 = vrot.slane %v2847_v58, 4 }
  0x5f   : > { %v456_v37 = vrot.slane %v2838_v6, 5  ;;  %v566_v32 = vmul.f32 %v2579_v41, %v2838_v6  ;;  %v1648_v7 = vadd.f32 %v1640_v9, %v1604_v52  ;;  %v350_v56 = vmul.f32 %v2525_v15, %v2923_v22 }
  0x60   : > { %v2934_v48 = vsel %vm377_vm2, %v366_v60, %v374_v49  ;;  %v866_v42 = vmul.f32 %v2633_v33, %v2838_v6  ;;  %v464_v62 = vrot.slane %v2847_v58, 5  ;;  %v501_v21 = vrot.slane %v2838_v6, 6 }
  0x61   : > { %v509_v53 = vrot.slane %v2847_v58, 6  ;;  %v574_v44 = vadd.f32 %v566_v32, %v537_v14  ;;  %v1129_v24 = vmul.f32 %v2709_v17, %v2877_v0  ;;  %v358_v43 = vadd.f32 %v350_v56, %v313_v13  ;;  %v3953_v32 = vld [vmem:[#allocation12_spill] sm:$0xff] }
  0x62   : > { %v874_v1 = vadd.f32 %v866_v42, %v837_v39  ;;  %v1392_v54 = vadd.f32 %v1384_v2, %v1348_v10  ;;  %v1684_v8 = vmul.f32 %v2919_v12, %v2844_v38  ;;  %v2947_v52 = vrot.slane %v2888_v35, %v3951_v55 }
  0x63   : > { %v610_v60 = vmul.f32 %v2586_v46, %v2883_v5  ;;  %v395_v58 = vmul.f32 %v2535_v20, %v2934_v48  ;;  %v2955_v14 = vsel %vm422_vm3, %v411_v11, %v419_v23  ;;  %v910_v10 = vmul.f32 %v2644_v40, %v2883_v5 }
  0x64   : > { %3952 = vst [vmem:[#allocation40_spill] sm:$0xff] %v2947_v52  ;;  %v1137_v13 = vadd.f32 %v1129_v24, %v1093_v31  ;;  %v1692_v56 = vadd.f32 %v1684_v8, %v1648_v7  ;;  %v2961_v38 = vsel %vm467_vm4, %v456_v37, %v464_v62  ;;  %v2965_v2 = vsel %vm512_vm5, %v501_v21, %v509_v53 }
  0x65   : > { %v618_v49 = vadd.f32 %v610_v60, %v574_v44  ;;  %v1428_v9 = vmul.f32 %v2789_v34, %v2877_v0  ;;  %v403_v39 = vadd.f32 %v395_v58, %v358_v43  ;;  %v918_v23 = vadd.f32 %v910_v10, %v874_v1 }
  0x66   : > { %v1165_v11 = vmul.f32 %v2722_v45, %v2838_v6  ;;  %v1728_v7 = vmul.f32 %v2947_v52, %v2877_v0  ;;  %v440_v31 = vmul.f32 %v2549_v25, %v2955_v14  ;;  %v654_v37 = vmul.f32 %v2589_v47, %v2923_v22 }
  0x67   : > { %v2979_v42 = vrot.slane %v2888_v35, %v3953_v32  ;;  %v485_v62 = vmul.f32 %v2559_v30, %v2961_v38  ;;  %v2985_v21 = vmul.f32 %v3948_v26, %v2965_v2  ;;  %v954_v0 = vmul.f32 %v2663_v59, %v2923_v22 }
  0x68   : > { %v1173_v53 = vadd.f32 %v1165_v11, %v1137_v13  ;;  %v662_v44 = vadd.f32 %v654_v37, %v618_v49  ;;  %v698_v24 = vmul.f32 %v2593_v50, %v2934_v48  ;;  %v1436_v43 = vadd.f32 %v1428_v9, %v1392_v54 }
  0x69   : > { %3954 = vst [vmem:[#allocation41_spill] sm:$0xff] %v2979_v42  ;;  %v1736_v1 = vadd.f32 %v1728_v7, %v1692_v56  ;;  %v448_v8 = vadd.f32 %v440_v31, %v403_v39  ;;  %v742_v60 = vmul.f32 %v2610_v61, %v2955_v14  ;;  %v962_v58 = vadd.f32 %v954_v0, %v918_v23 }
  0x6a   : > { %v1209_v10 = vmul.f32 %v2729_v19, %v2883_v5  ;;  %v786_v32 = vmul.f32 %v2622_v18, %v2961_v38  ;;  %v1465_v13 = vmul.f32 %v2815_v51, %v2838_v6  ;;  %v1765_v49 = vmul.f32 %v2979_v42, %v2838_v6 }
  0x6b   : > { %v3003_v54 = vrot.slane %v2888_v35, %v2528_v16  ;;  %v3007_v56 = vmul.f32 %v2628_v28, %v2965_v2  ;;  %v998_v9 = vmul.f32 %v2668_v63, %v2934_v48  ;;  %v1042_v39 = vmul.f32 %v2683_v36, %v2955_v14 }
  0x6c   : > { %v1217_v23 = vadd.f32 %v1209_v10, %v1173_v53  ;;  %v706_v11 = vadd.f32 %v698_v24, %v662_v44  ;;  %v1086_v7 = vmul.f32 %v2696_v57, %v2961_v38  ;;  %v1473_v6 = vadd.f32 %v1465_v13, %v1436_v43  ;;  %v3956_v24 = vld [vmem:[#allocation17_spill] sm:$0xff]  ;;  %v3031_v43 = vld [vmem:[#allocation2 + $0x60] sm:$0xff]  ;;  %v3962_v57 = vld [vmem:[#allocation18_spill] sm:$0xff] }
  0x6d   : > { %3955 = vst [vmem:[#allocation42_spill] sm:$0xff] %v3003_v54  ;;  %v1773_v31 = vadd.f32 %v1765_v49, %v1736_v1  ;;  %v493_v37 = vadd.f32 %v485_v62, %v448_v8  ;;  %v1006_v0 = vadd.f32 %v998_v9, %v962_v58  ;;  %v3017_v16 = vmul.f32 %v2709_v17, %v2965_v2  ;;  %v3033_v1 = vld [vmem:[#allocation2 + $0x68] sm:$0xff]  ;;  %v3959_v13 = vld [vmem:[#allocation33_spill] sm:$0xff] }
  0x6e   : > { %v1253_v55 = vmul.f32 %v2741_v4, %v2923_v22  ;;  %v1297_v42 = vmul.f32 %v2745_v29, %v2934_v48  ;;  %v1509_v53 = vmul.f32 %v2833_v27, %v2883_v5  ;;  %v1809_v44 = vmul.f32 %v3003_v54, %v2883_v5  ;;  %v3958_v58 = vld [vmem:[#allocation32_spill] sm:$0xff]  ;;  %v3961_v17 = vld [vmem:[#allocation9_spill] sm:$0xff] }
  0x6f   : > { %v3029_v62 = vrot.slane %v2888_v35, %v3956_v24  ;;  %v1341_v10 = vmul.f32 %v3958_v58, %v2955_v14  ;;  %v1385_v49 = vmul.f32 %v3959_v13, %v2961_v38  ;;  %v3041_v9 = vmul.f32 %v2789_v34, %v2965_v2  ;;  %v3960_v24 = vld [vmem:[#allocation37_spill] sm:$0xff] }
  0x70   : > { %v1261_v8 = vadd.f32 %v1253_v55, %v1217_v23  ;;  %v750_v5 = vadd.f32 %v742_v60, %v706_v11  ;;  %v1517_v54 = vadd.f32 %v1509_v53, %v1473_v6  ;;  %v1553_v27 = vmul.f32 %v3960_v24, %v2923_v22  ;;  %v3968_v24 = vld [vmem:[#allocation11_spill] sm:$0xff] }
  0x71   : > { %3957 = vst [vmem:[#allocation43_spill] sm:$0xff] %v3029_v62  ;;  %v1817_v29 = vadd.f32 %v1809_v44, %v1773_v31  ;;  %v1050_v4 = vadd.f32 %v1042_v39, %v1006_v0  ;;  %v259_v55 = vmul.f32 %v3961_v17, %v3031_v43  ;;  %v275_v23 = vrot.slane %v3031_v43, 1  ;;  %v3964_v39 = vld [vmem:[#allocation20_spill] sm:$0xff]  ;;  %v3966_v0 = vld [vmem:[#allocation13_spill] sm:$0xff]  ;;  %v3967_v17 = vld [vmem:[#allocation38_spill] sm:$0xff] }
  0x72   : > { %v283_v58 = vrot.slane %v3033_v1, 1  ;;  %v1853_v13 = vmul.f32 %v3029_v62, %v2923_v22  ;;  %v3053_v34 = vrot.slane %v2888_v35, %v3962_v57  ;;  %v322_v60 = vrot.slane %v3031_v43, 2 }
  0x73   : > { %v330_v11 = vrot.slane %v3033_v1, 2  ;;  %v1305_v6 = vadd.f32 %v1297_v42, %v1261_v8  ;;  %v3059_v31 = vrot.slane %v2888_v35, %v3964_v39  ;;  %v267_v53 = vadd.f32 %v3966_v0, %v259_v55  ;;  %v3969_v42 = vld [vmem:[#allocation39_spill] sm:$0xff] }
  0x74   : > { %3963 = vst [vmem:[#allocation44_spill] sm:$0xff] %v3053_v34  ;;  %v3064_v44 = vsel %vm287_vm0, %v275_v23, %v283_v58  ;;  %v1561_v22 = vadd.f32 %v1553_v27, %v1517_v54  ;;  %v1597_v57 = vmul.f32 %v3967_v17, %v2934_v48  ;;  %v1861_v62 = vadd.f32 %v1853_v13, %v1817_v29 }
  0x75   : > { %3965 = vst [vmem:[#allocation20_spill] sm:$0xff] %v3059_v31  ;;  %v306_v36 = vmul.f32 %v3968_v24, %v3064_v44  ;;  %v794_v51 = vadd.f32 %v786_v32, %v750_v5  ;;  %v1641_v8 = vmul.f32 %v3969_v42, %v2955_v14  ;;  %v367_v35 = vrot.slane %v3031_v43, 3  ;;  %v3085_v32 = vld [vmem:[%s3799_s1 + $0x28] sm:$0xff]  ;;  %v3970_v24 = vld [vmem:[#allocation6_spill] sm:$0xff] }
  0x76   : > { %v375_v55 = vrot.slane %v3033_v1, 3  ;;  %v1094_v0 = vadd.f32 %v1086_v7, %v1050_v4  ;;  %v1685_v58 = vmul.f32 %v2919_v12, %v2961_v38  ;;  %v1897_v27 = vmul.f32 %v3053_v34, %v2934_v48 }
  0x77   : > { %v3080_v29 = vsel %vm332_vm1, %v322_v60, %v330_v11  ;;  %v1349_v54 = vadd.f32 %v1341_v10, %v1305_v6  ;;  %v1941_v13 = vmul.f32 %v3059_v31, %v2955_v14  ;;  %v314_v4 = vadd.f32 %v306_v36, %v267_v53 }
  0x78   : > { %v538_v7 = vadd.f32 %v2985_v21, %v493_v37  ;;  %v1605_v5 = vadd.f32 %v1597_v57, %v1561_v22  ;;  %v1905_v23 = vadd.f32 %v1897_v27, %v1861_v62  ;;  %v3092_v48 = vrot.slane %v3085_v32, %v3970_v24 }
  0x79   : > { %v412_v60 = vrot.slane %v3031_v43, 4  ;;  %v351_v11 = vmul.f32 %v2525_v15, %v3080_v29  ;;  %v3099_v10 = vsel %vm377_vm2, %v367_v35, %v375_v55  ;;  %v420_v14 = vrot.slane %v3033_v1, 4 }
  0x7a   : > { %3971 = vst [vmem:[#allocation13_spill] sm:$0xff] %v3092_v48  ;;  %v567_v36 = vmul.f32 %v2579_v41, %v3031_v43  ;;  %v457_v57 = vrot.slane %v3031_v43, 5  ;;  %v465_v21 = vrot.slane %v3033_v1, 5  ;;  %v502_v37 = vrot.slane %v3031_v43, 6  ;;  %v3972_v41 = vld [vmem:[#allocation7_spill] sm:$0xff] }
  0x7b   : > { %v510_v24 = vrot.slane %v3033_v1, 6  ;;  %v359_v62 = vadd.f32 %v351_v11, %v314_v4  ;;  %v838_v53 = vadd.f32 %v3007_v56, %v794_v51  ;;  %v867_v22 = vmul.f32 %v2633_v33, %v3031_v43 }
  0x7c   : > { %v575_v6 = vadd.f32 %v567_v36, %v538_v7  ;;  %v1649_v35 = vadd.f32 %v1641_v8, %v1605_v5  ;;  %v1729_v55 = vmul.f32 %v2947_v52, %v2965_v2  ;;  %v1949_v27 = vadd.f32 %v1941_v13, %v1905_v23 }
  0x7d   : > { %v3115_v15 = vrot.slane %v3085_v32, %v3972_v41  ;;  %v1393_v31 = vadd.f32 %v1385_v49, %v1349_v54  ;;  %v396_v1 = vmul.f32 %v2535_v20, %v3099_v10  ;;  %v611_v4 = vmul.f32 %v2586_v46, %v3064_v44 }
  0x7e   : > { %v875_v51 = vadd.f32 %v867_v22, %v838_v53  ;;  %v1985_v56 = vmul.f32 %v3092_v48, %v2961_v38  ;;  %v3125_v8 = vsel %vm422_vm3, %v412_v60, %v420_v14  ;;  %v3129_v13 = vsel %vm467_vm4, %v457_v57, %v465_v21 }
  0x7f   : > { %v1138_v41 = vadd.f32 %v3017_v16, %v1094_v0  ;;  %v404_v49 = vadd.f32 %v396_v1, %v359_v62  ;;  %v3134_v54 = vsel %vm512_vm5, %v502_v37, %v510_v24  ;;  %v619_v7 = vadd.f32 %v611_v4, %v575_v6 }
  0x80   : > { %v911_v5 = vmul.f32 %v2644_v40, %v3064_v44  ;;  %v1693_v38 = vadd.f32 %v1685_v58, %v1649_v35  ;;  %v1993_v23 = vadd.f32 %v1985_v56, %v1949_v27  ;;  %v2029_v60 = vmul.f32 %v3115_v15, %v2965_v2 }
  0x81   : > { %v1166_v11 = vmul.f32 %v2722_v45, %v3031_v43  ;;  %v441_v16 = vmul.f32 %v2549_v25, %v3125_v8  ;;  %v655_v0 = vmul.f32 %v2589_v47, %v3080_v29  ;;  %v699_v14 = vmul.f32 %v2593_v50, %v3099_v10 }
  0x82   : > { %v919_v36 = vadd.f32 %v911_v5, %v875_v51  ;;  %v486_v58 = vmul.f32 %v2559_v30, %v3129_v13  ;;  %v3152_v57 = vmul.f32 %v3948_v26, %v3134_v54  ;;  %v743_v2 = vmul.f32 %v2610_v61, %v3125_v8  ;;  %v3973_v51 = vld [vmem:[#allocation35_spill] sm:$0xff] }
  0x83   : > { %v1174_v21 = vadd.f32 %v1166_v11, %v1138_v41  ;;  %v449_v37 = vadd.f32 %v441_v16, %v404_v49  ;;  %v663_v24 = vadd.f32 %v655_v0, %v619_v7  ;;  %v955_v62 = vmul.f32 %v2663_v59, %v3080_v29  ;;  %v3975_v41 = vld [vmem:[#allocation25_spill] sm:$0xff]  ;;  %v3976_v7 = vld [vmem:[#allocation26_spill] sm:$0xff]  ;;  %v3977_v11 = vld [vmem:[#allocation27_spill] sm:$0xff] }
  0x84   : > { %v1437_v6 = vadd.f32 %v3041_v9, %v1393_v31  ;;  %v787_v53 = vmul.f32 %v2622_v18, %v3129_v13  ;;  %v3163_v22 = vmul.f32 %v2628_v28, %v3134_v54  ;;  %v1210_v35 = vmul.f32 %v2729_v19, %v3064_v44  ;;  %v3974_v9 = vld [vmem:[#allocation41_spill] sm:$0xff]  ;;  %v3980_v59 = vld [vmem:[#allocation8_spill] sm:$0xff] }
  0x85   : > { %v1737_v27 = vadd.f32 %v1729_v55, %v1693_v38  ;;  %v963_v1 = vadd.f32 %v955_v62, %v919_v36  ;;  %v999_v4 = vmul.f32 %v2668_v63, %v3099_v10  ;;  %v1466_v56 = vmul.f32 %v3973_v51, %v3031_v43  ;;  %v3978_v51 = vld [vmem:[#allocation30_spill] sm:$0xff] }
  0x86   : > { %v1766_v31 = vmul.f32 %v3974_v9, %v3031_v43  ;;  %v1043_v49 = vmul.f32 %v3975_v41, %v3125_v8  ;;  %v1087_v5 = vmul.f32 %v3976_v7, %v3129_v13  ;;  %v3179_v16 = vmul.f32 %v3977_v11, %v3134_v54  ;;  %v3979_v9 = vld [vmem:[#allocation31_spill] sm:$0xff]  ;;  %v3982_v11 = vld [vmem:[#allocation36_spill] sm:$0xff] }
  0x87   : > { %v1218_v55 = vadd.f32 %v1210_v35, %v1174_v21  ;;  %v3181_v38 = vadd.f32 %v486_v58, %v449_v37  ;;  %v707_v0 = vadd.f32 %v699_v14, %v663_v24  ;;  %v1474_v36 = vadd.f32 %v1466_v56, %v1437_v6  ;;  %v3983_v58 = vld [vmem:[#allocation42_spill] sm:$0xff]  ;;  %v3984_v37 = vld [vmem:[#allocation12_spill] sm:$0xff] }
  0x88   : > { %v1774_v62 = vadd.f32 %v1766_v31, %v1737_v27  ;;  %v1254_v19 = vmul.f32 %v3978_v51, %v3080_v29  ;;  %v1298_v63 = vmul.f32 %v3979_v9, %v3099_v10  ;;  %v2037_v41 = vadd.f32 %v2029_v60, %v1993_v23  ;;  %v3986_v35 = vld [vmem:[#allocation32_spill] sm:$0xff] }
  0x89   : > { %v3189_v7 = vrot.slane %v3085_v32, %v3980_v59  ;;  %v1007_v45 = vadd.f32 %v999_v4, %v963_v1  ;;  %v1510_v21 = vmul.f32 %v3982_v11, %v3064_v44  ;;  %v1810_v14 = vmul.f32 %v3983_v58, %v3064_v44  ;;  %v3987_v59 = vld [vmem:[#allocation15_spill] sm:$0xff]  ;;  %v3989_v4 = vld [vmem:[#allocation33_spill] sm:$0xff] }
  0x8a   : > { %v3197_v24 = vrot.slane %v3085_v32, %v3984_v37  ;;  %v1262_v6 = vadd.f32 %v1254_v19, %v1218_v55  ;;  %v1342_v27 = vmul.f32 %v3986_v35, %v3125_v8  ;;  %v3205_v60 = vrot.slane %v3085_v32, %v3987_v59  ;;  %v3990_v37 = vld [vmem:[#allocation34_spill] sm:$0xff] }
  0x8b   : > { %3981 = vst [vmem:[#allocation6_spill] sm:$0xff] %v3189_v7  ;;  %v2066_v23 = vmul.f32 %v3189_v7, %v3031_v43  ;;  %v751_v1 = vadd.f32 %v743_v2, %v707_v0  ;;  %v3209_v56 = vmul.f32 %v3989_v4, %v3129_v13  ;;  %v1518_v31 = vadd.f32 %v1510_v21, %v1474_v36  ;;  %v3991_v43 = vld [vmem:[#allocation17_spill] sm:$0xff] }
  0x8c   : > { %3985 = vst [vmem:[#allocation7_spill] sm:$0xff] %v3197_v24  ;;  %3988 = vst [vmem:[#allocation30_spill] sm:$0xff] %v3205_v60  ;;  %v1818_v58 = vadd.f32 %v1810_v14, %v1774_v62  ;;  %v3213_v19 = vmul.f32 %v3990_v37, %v3134_v54  ;;  %v2110_v11 = vmul.f32 %v3197_v24, %v3064_v44  ;;  %v3993_v2 = vld [vmem:[#allocation37_spill] sm:$0xff]  ;;  %v3994_v62 = vld [vmem:[#allocation43_spill] sm:$0xff] }
  0x8d   : > { %v2074_v55 = vadd.f32 %v2066_v23, %v2037_v41  ;;  %v3219_v7 = vrot.slane %v3085_v32, %v3991_v43  ;;  %v1051_v59 = vadd.f32 %v1043_v49, %v1007_v45  ;;  %v1554_v0 = vmul.f32 %v3993_v2, %v3080_v29  ;;  %v3995_v44 = vld [vmem:[#allocation18_spill] sm:$0xff] }
  0x8e   : > { %v1598_v36 = vmul.f32 %v3967_v17, %v3099_v10  ;;  %v1854_v21 = vmul.f32 %v3994_v62, %v3080_v29  ;;  %v1306_v14 = vadd.f32 %v1298_v63, %v1262_v6  ;;  %v2154_v41 = vmul.f32 %v3205_v60, %v3080_v29  ;;  %v3242_v63 = vld [vmem:[%s3799_s1 + $0x30] ss:$0 sm:$0xff] }
  0x8f   : > { %3992 = vst [vmem:[#allocation8_spill] sm:$0xff] %v3219_v7  ;;  %v2118_v37 = vadd.f32 %v2110_v11, %v2074_v55  ;;  %v3231_v23 = vrot.slane %v3085_v32, %v3995_v44  ;;  %v3233_v43 = vadd.f32 %v787_v53, %v751_v1  ;;  %v1562_v45 = vadd.f32 %v1554_v0, %v1518_v31  ;;  %v3999_v1 = vld [vmem:[#allocation20_spill] sm:$0xff]  ;;  %v3260_v55 = vld [vmem:[#allocation2 + $0x70] sm:$0xff]  ;;  %v248_v0 = vld [vmem:[#allocation2 + $0x78] sm:$0xff] }
  0x90   : > { %v1862_v49 = vadd.f32 %v1854_v21, %v1818_v58  ;;  %v3237_v24 = vrot.slane %v3085_v32, %v3964_v39  ;;  %3998 = vst [vmem:[#allocation17_spill] sm:$0xff] %v3242_v63  ;;  %v1642_v29 = vmul.f32 %v3969_v42, %v3125_v8  ;;  %v1686_v11 = vmul.f32 %v2919_v12, %v3129_v13 }
  0x91   : > { %3996 = vst [vmem:[#allocation12_spill] sm:$0xff] %v3231_v23  ;;  %v2162_v6 = vadd.f32 %v2154_v41, %v2118_v37  ;;  %v2198_v53 = vmul.f32 %v3219_v7, %v3099_v10  ;;  %v3250_v58 = vadd.f32 %v1087_v5, %v1051_v59  ;;  %v3254_v39 = vmul.f32 %v2947_v52, %v3134_v54 }
  0x92   : > { %3997 = vst [vmem:[#allocation15_spill] sm:$0xff] %v3237_v24  ;;  %v1898_v32 = vmul.f32 %v3053_v34, %v3099_v10  ;;  %v1942_v31 = vmul.f32 %v3999_v1, %v3125_v8  ;;  %v1350_v21 = vadd.f32 %v1342_v27, %v1306_v14  ;;  %v1986_v37 = vmul.f32 %v3092_v48, %v3129_v13  ;;  %v4000_v1 = vld [vmem:[#allocation9_spill] sm:$0xff] }
  0x93   : > { %v2206_v41 = vadd.f32 %v2198_v53, %v2162_v6  ;;  %v2242_v5 = vmul.f32 %v3231_v23, %v3125_v8  ;;  %v1606_v59 = vadd.f32 %v1598_v36, %v1562_v45  ;;  %v2286_v7 = vmul.f32 %v3237_v24, %v3129_v13  ;;  %v2430_v13 = vld [vmem:[%s3800_s2] ss:$0 sm:$0xff] }
  0x94   : > { %v1906_v44 = vadd.f32 %v1898_v32, %v1862_v49  ;;  %v2330_v10 = vmul.f32 %v3242_v63, %v3134_v54  ;;  %v260_v34 = vmul.f32 %v4000_v1, %v3260_v55  ;;  %v276_v27 = vrot.slane %v3260_v55, 1 }
  0x95   : > { %v2250_v60 = vadd.f32 %v2242_v5, %v2206_v41  ;;  %v284_v14 = vrot.slane %v248_v0, 1  ;;  %v323_v6 = vrot.slane %v3260_v55, 2  ;;  %v331_v53 = vrot.slane %v248_v0, 2  ;;  %v4001_v5 = vld [vmem:[#allocation11_spill] sm:$0xff] }
  0x96   : > { %v368_v8 = vrot.slane %v3260_v55, 3  ;;  %v376_v36 = vrot.slane %v248_v0, 3  ;;  %v268_v49 = vadd.f32 %v2430_v13, %v260_v34  ;;  %v413_v1 = vrot.slane %v3260_v55, 4 }
  0x97   : > { %v2294_v45 = vadd.f32 %v2286_v7, %v2250_v60  ;;  %v3280_v32 = vsel %vm287_vm0, %v276_v27, %v284_v14  ;;  %v1650_v41 = vadd.f32 %v1642_v29, %v1606_v59  ;;  %v3287_v24 = vsel %vm332_vm1, %v323_v6, %v331_v53  ;;  %v4002_v29 = vld [vmem:[#allocation14_spill] sm:$0xff] }
  0x98   : > { %v307_v63 = vmul.f32 %v4001_v5, %v3280_v32  ;;  %v421_v7 = vrot.slane %v248_v0, 4  ;;  %v1950_v60 = vadd.f32 %v1942_v31, %v1906_v44  ;;  %v3291_v34 = vsel %vm377_vm2, %v368_v8, %v376_v36  ;;  %v4003_v44 = vld [vmem:[#allocation22_spill] sm:$0xff] }
  0x99   : > { %v2338_v23 = vadd.f32 %v2330_v10, %v2294_v45  ;;  %v458_v27 = vrot.slane %v3260_v55, 5  ;;  %v352_v59 = vmul.f32 %v4002_v29, %v3287_v24  ;;  %v466_v13 = vrot.slane %v248_v0, 5 }
  0x9a   : > { %v315_v14 = vadd.f32 %v307_v63, %v268_v49  ;;  %v503_v5 = vrot.slane %v3260_v55, 6  ;;  %v3299_v6 = vsel %vm422_vm3, %v413_v1, %v421_v7  ;;  %v511_v53 = vrot.slane %v248_v0, 6 }
  0x9b   : > { %v539_v31 = vadd.f32 %v3152_v57, %v3181_v38  ;;  %v568_v10 = vmul.f32 %v4003_v44, %v3260_v55  ;;  %2346 = vst [vmem:[%s2517_s23 + $0x1] sm:$0xff] %v2338_v23  ;;  %v1394_v63 = vadd.f32 %v3209_v56, %v1350_v21  ;;  %v3309_v8 = vmul.f32 %v3115_v15, %v3134_v54 }
  0x9c   : > { %v360_v36 = vadd.f32 %v352_v59, %v315_v14  ;;  %v397_v45 = vmul.f32 %v2535_v20, %v3291_v34  ;;  %v3315_v0 = vsel %vm467_vm4, %v458_v27, %v466_v13  ;;  %v3319_v57 = vsel %vm512_vm5, %v503_v5, %v511_v53  ;;  %v4004_v59 = vld [vmem:[#allocation28_spill] sm:$0xff] }
  0x9d   : > { %v576_v38 = vadd.f32 %v568_v10, %v539_v31  ;;  %v612_v56 = vmul.f32 %v2586_v46, %v3280_v32  ;;  %v1694_v23 = vadd.f32 %v1686_v11, %v1650_v41  ;;  %v1994_v21 = vadd.f32 %v1986_v37, %v1950_v60  ;;  %v4005_v31 = vld [vmem:[#allocation23_spill] sm:$0xff] }
  0x9e   : > { %v405_v54 = vadd.f32 %v397_v45, %v360_v36  ;;  %v442_v49 = vmul.f32 %v2549_v25, %v3299_v6  ;;  %v656_v20 = vmul.f32 %v2589_v47, %v3287_v24  ;;  %v839_v7 = vadd.f32 %v3163_v22, %v3233_v43  ;;  %v4006_v36 = vld [vmem:[#allocation24_spill] sm:$0xff] }
  0x9f   : > { %v620_v1 = vadd.f32 %v612_v56, %v576_v38  ;;  %v868_v27 = vmul.f32 %v2633_v33, %v3260_v55  ;;  %v487_v14 = vmul.f32 %v2559_v30, %v3315_v0  ;;  %v3335_v11 = vmul.f32 %v3948_v26, %v3319_v57  ;;  %v4007_v38 = vld [vmem:[#allocation25_spill] sm:$0xff] }
  0xa0   : > { %v700_v25 = vmul.f32 %v2593_v50, %v3291_v34  ;;  %v744_v37 = vmul.f32 %v2610_v61, %v3299_v6  ;;  %v450_v41 = vadd.f32 %v442_v49, %v405_v54  ;;  %v912_v22 = vmul.f32 %v2644_v40, %v3280_v32  ;;  %v4008_v54 = vld [vmem:[#allocation26_spill] sm:$0xff] }
  0xa1   : > { %v664_v60 = vadd.f32 %v656_v20, %v620_v1  ;;  %v876_v29 = vadd.f32 %v868_v27, %v839_v7  ;;  %v788_v43 = vmul.f32 %v2622_v18, %v3315_v0  ;;  %v3347_v30 = vmul.f32 %v2628_v28, %v3319_v57  ;;  %v4010_v27 = vld [vmem:[#allocation27_spill] sm:$0xff] }
  0xa2   : > { %v1139_v26 = vadd.f32 %v3179_v16, %v3250_v58  ;;  %v1167_v13 = vmul.f32 %v4004_v59, %v3260_v55  ;;  %v956_v10 = vmul.f32 %v4005_v31, %v3287_v24  ;;  %v1000_v45 = vmul.f32 %v4006_v36, %v3291_v34  ;;  %v4009_v16 = vld [vmem:[#allocation29_spill] sm:$0xff]  ;;  %v4011_v36 = vld [vmem:[#allocation35_spill] sm:$0xff] }
  0xa3   : > { %v708_v5 = vadd.f32 %v700_v25, %v664_v60  ;;  %v920_v53 = vadd.f32 %v912_v22, %v876_v29  ;;  %v1044_v56 = vmul.f32 %v4007_v38, %v3299_v6  ;;  %v1088_v49 = vmul.f32 %v4008_v54, %v3315_v0 }
  0xa4   : > { %v1175_v1 = vadd.f32 %v1167_v13, %v1139_v26  ;;  %v1211_v58 = vmul.f32 %v4009_v16, %v3280_v32  ;;  %v495_v20 = vadd.f32 %v487_v14, %v450_v41  ;;  %v3365_v25 = vmul.f32 %v4010_v27, %v3319_v57 }
  0xa5   : > { %v964_v7 = vadd.f32 %v956_v10, %v920_v53  ;;  %v1438_v60 = vadd.f32 %v3213_v19, %v1394_v63  ;;  %v752_v29 = vadd.f32 %v744_v37, %v708_v5  ;;  %v1255_v38 = vmul.f32 %v3978_v51, %v3287_v24  ;;  %v4012_v63 = vld [vmem:[#allocation34_spill] sm:$0xff]  ;;  %v4013_v53 = vld [vmem:[#allocation36_spill] sm:$0xff] }
  0xa6   : > { %v1219_v22 = vadd.f32 %v1211_v58, %v1175_v1  ;;  %v1467_v54 = vmul.f32 %v4011_v36, %v3260_v55  ;;  %v1299_v13 = vmul.f32 %v3979_v9, %v3291_v34  ;;  %v1343_v14 = vmul.f32 %v3986_v35, %v3299_v6 }
  0xa7   : > { %v1008_v26 = vadd.f32 %v1000_v45, %v964_v7  ;;  %v3378_v41 = vmul.f32 %v3989_v4, %v3315_v0  ;;  %v3382_v37 = vmul.f32 %v4012_v63, %v3319_v57  ;;  %v1511_v10 = vmul.f32 %v4013_v53, %v3280_v32  ;;  %v4014_v7 = vld [vmem:[#allocation41_spill] sm:$0xff] }
  0xa8   : > { %v1263_v19 = vadd.f32 %v1255_v38, %v1219_v22  ;;  %v1475_v5 = vadd.f32 %v1467_v54, %v1438_v60  ;;  %v1555_v1 = vmul.f32 %v3993_v2, %v3287_v24  ;;  %v1738_v58 = vadd.f32 %v3254_v39, %v1694_v23 }
  0xa9   : > { %v1052_v45 = vadd.f32 %v1044_v56, %v1008_v26  ;;  %v1767_v35 = vmul.f32 %v4014_v7, %v3260_v55  ;;  %v796_v4 = vadd.f32 %v788_v43, %v752_v29  ;;  %v1599_v22 = vmul.f32 %v3967_v17, %v3291_v34  ;;  %v4015_v26 = vld [vmem:[#allocation42_spill] sm:$0xff] }
  0xaa   : > { %v1307_v9 = vadd.f32 %v1299_v13, %v1263_v19  ;;  %v1519_v38 = vadd.f32 %v1511_v10, %v1475_v5  ;;  %v1643_v54 = vmul.f32 %v3969_v42, %v3299_v6  ;;  %v3397_v56 = vmul.f32 %v2919_v12, %v3315_v0  ;;  %v4016_v10 = vld [vmem:[#allocation44_spill] sm:$0xff] }
  0xab   : > { %v1775_v60 = vadd.f32 %v1767_v35, %v1738_v58  ;;  %v1811_v39 = vmul.f32 %v4015_v26, %v3280_v32  ;;  %v3403_v43 = vmul.f32 %v2947_v52, %v3319_v57  ;;  %v1855_v29 = vmul.f32 %v3994_v62, %v3287_v24  ;;  %v4017_v35 = vld [vmem:[#allocation6_spill] sm:$0xff]  ;;  %v3414_v26 = vld [vmem:[#allocation2 + $0x80] sm:$0xff] }
  0xac   : > { %v1563_v23 = vadd.f32 %v1555_v1, %v1519_v38  ;;  %v2038_v13 = vadd.f32 %v3309_v8, %v1994_v21  ;;  %v3408_v19 = vadd.f32 %v1088_v49, %v1052_v45  ;;  %v1899_v12 = vmul.f32 %v4016_v10, %v3291_v34  ;;  %v4018_v38 = vld [vmem:[#allocation20_spill] sm:$0xff]  ;;  %v4019_v8 = vld [vmem:[#allocation7_spill] sm:$0xff]  ;;  %v4020_v10 = vld [vmem:[#allocation30_spill] sm:$0xff] }
  0xad   : > { %v1819_v5 = vadd.f32 %v1811_v39, %v1775_v60  ;;  %v2067_v58 = vmul.f32 %v4017_v35, %v3260_v55  ;;  %v1351_v1 = vadd.f32 %v1343_v14, %v1307_v9  ;;  %v1943_v52 = vmul.f32 %v4018_v38, %v3299_v6  ;;  %v557_v49 = vld [vmem:[#allocation2 + $0x88] sm:$0xff] }
  0xae   : > { %v1987_v62 = vmul.f32 %v3092_v48, %v3315_v0  ;;  %v2111_v21 = vmul.f32 %v4019_v8, %v3280_v32  ;;  %v1607_v45 = vadd.f32 %v1599_v22, %v1563_v23  ;;  %v2155_v42 = vmul.f32 %v4020_v10, %v3287_v24  ;;  %v4021_v55 = vld [vmem:[#allocation8_spill] sm:$0xff] }
  0xaf   : > { %v1863_v60 = vadd.f32 %v1855_v29, %v1819_v5  ;;  %v2075_v39 = vadd.f32 %v2067_v58, %v2038_v13  ;;  %v2199_v35 = vmul.f32 %v4021_v55, %v3291_v34  ;;  %v540_v9 = vadd.f32 %v3335_v11, %v495_v20  ;;  %v4022_v23 = vld [vmem:[#allocation12_spill] sm:$0xff]  ;;  %v4023_v11 = vld [vmem:[#allocation15_spill] sm:$0xff] }
  0xb0   : > { %v569_v14 = vmul.f32 %v4003_v44, %v3414_v26  ;;  %v585_v48 = vrot.slane %v3414_v26, 1  ;;  %v593_v32 = vrot.slane %v557_v49, 1  ;;  %v629_v22 = vrot.slane %v3414_v26, 2 }
  0xb1   : > { %v1907_v38 = vadd.f32 %v1899_v12, %v1863_v60  ;;  %v2119_v17 = vadd.f32 %v2111_v21, %v2075_v39  ;;  %v2243_v29 = vmul.f32 %v4022_v23, %v3299_v6  ;;  %v637_v24 = vrot.slane %v557_v49, 2 }
  0xb2   : > { %v577_v13 = vadd.f32 %v569_v14, %v540_v9  ;;  %v673_v5 = vrot.slane %v3414_v26, 3  ;;  %v2287_v20 = vmul.f32 %v4023_v11, %v3315_v0  ;;  %v3438_v44 = vsel %vm287_vm0, %v585_v48, %v593_v32 }
  0xb3   : > { %v2163_v34 = vadd.f32 %v2155_v42, %v2119_v17  ;;  %v681_v12 = vrot.slane %v557_v49, 3  ;;  %v613_v58 = vmul.f32 %v2586_v46, %v3438_v44  ;;  %v3444_v21 = vsel %vm332_vm1, %v629_v22, %v637_v24  ;;  %v4024_v24 = vld [vmem:[#allocation17_spill] sm:$0xff] }
  0xb4   : > { %v717_v6 = vrot.slane %v3414_v26, 4  ;;  %v725_v60 = vrot.slane %v557_v49, 4  ;;  %v1651_v39 = vadd.f32 %v1643_v54, %v1607_v45  ;;  %v1951_v17 = vadd.f32 %v1943_v52, %v1907_v38 }
  0xb5   : > { %v2207_v42 = vadd.f32 %v2199_v35, %v2163_v34  ;;  %v3449_v0 = vsel %vm377_vm2, %v673_v5, %v681_v12  ;;  %v621_v48 = vadd.f32 %v613_v58, %v577_v13  ;;  %v657_v9 = vmul.f32 %v2589_v47, %v3444_v21 }
  0xb6   : > { %v3455_v46 = vsel %vm422_vm3, %v717_v6, %v725_v60  ;;  %v761_v14 = vrot.slane %v3414_v26, 5  ;;  %v701_v54 = vmul.f32 %v2593_v50, %v3449_v0  ;;  %v769_v52 = vrot.slane %v557_v49, 5 }
  0xb7   : > { %v2251_v32 = vadd.f32 %v2243_v29, %v2207_v42  ;;  %v805_v35 = vrot.slane %v3414_v26, 6  ;;  %v665_v38 = vadd.f32 %v657_v9, %v621_v48  ;;  %v813_v45 = vrot.slane %v557_v49, 6 }
  0xb8   : > { %v840_v22 = vadd.f32 %v3347_v30, %v796_v4  ;;  %v869_v47 = vmul.f32 %v2633_v33, %v3414_v26  ;;  %v2331_v5 = vmul.f32 %v4024_v24, %v3319_v57  ;;  %v745_v29 = vmul.f32 %v2610_v61, %v3455_v46 }
  0xb9   : > { %v2295_v13 = vadd.f32 %v2287_v20, %v2251_v32  ;;  %v3470_v50 = vsel %vm467_vm4, %v761_v14, %v769_v52  ;;  %v709_v34 = vadd.f32 %v701_v54, %v665_v38  ;;  %v3474_v49 = vsel %vm512_vm5, %v805_v35, %v813_v45  ;;  %v4027_v32 = vld [vmem:[#allocation26_spill] sm:$0xff] }
  0xba   : > { %v877_v4 = vadd.f32 %v869_v47, %v840_v22  ;;  %v913_v30 = vmul.f32 %v2644_v40, %v3438_v44  ;;  %v1395_v20 = vadd.f32 %v3378_v41, %v1351_v1  ;;  %v1695_v12 = vadd.f32 %v3397_v56, %v1651_v39  ;;  %v4026_v39 = vld [vmem:[#allocation25_spill] sm:$0xff]  ;;  %v4028_v47 = vld [vmem:[#allocation31_spill] sm:$0xff] }
  0xbb   : > { %v2031_v61 = vmul.f32 %v3115_v15, %v3319_v57  ;;  %v2339_v58 = vadd.f32 %v2331_v5, %v2295_v13  ;;  %v1995_v6 = vadd.f32 %v1987_v62, %v1951_v17  ;;  %v753_v60 = vadd.f32 %v745_v29, %v709_v34  ;;  %v4025_v62 = vld [vmem:[#allocation24_spill] sm:$0xff]  ;;  %v4030_v34 = vld [vmem:[#allocation33_spill] sm:$0xff] }
  0xbc   : > { %v921_v42 = vadd.f32 %v913_v30, %v877_v4  ;;  %v957_v48 = vmul.f32 %v4005_v31, %v3444_v21  ;;  %v789_v9 = vmul.f32 %v2622_v18, %v3470_v50  ;;  %v833_v14 = vmul.f32 %v2628_v28, %v3474_v49  ;;  %v4029_v5 = vld [vmem:[#allocation32_spill] sm:$0xff] }
  0xbd   : > { %v1140_v41 = vadd.f32 %v3365_v25, %v3408_v19  ;;  %v1168_v56 = vmul.f32 %v4004_v59, %v3414_v26  ;;  %2347 = vst [vmem:[%s2517_s23 + $0x9] sm:$0xff] %v2339_v58  ;;  %v1001_v1 = vmul.f32 %v4025_v62, %v3449_v0  ;;  %v1045_v17 = vmul.f32 %v4026_v39, %v3455_v46 }
  0xbe   : > { %v965_v57 = vadd.f32 %v957_v48, %v921_v42  ;;  %v1089_v18 = vmul.f32 %v4027_v32, %v3470_v50  ;;  %v3501_v28 = vmul.f32 %v4010_v27, %v3474_v49  ;;  %v1212_v25 = vmul.f32 %v4009_v16, %v3438_v44 }
  0xbf   : > { %v1176_v54 = vadd.f32 %v1168_v56, %v1140_v41  ;;  %v1439_v19 = vadd.f32 %v3382_v37, %v1395_v20  ;;  %v797_v52 = vadd.f32 %v789_v9, %v753_v60  ;;  %v1256_v38 = vmul.f32 %v3978_v51, %v3444_v21  ;;  %v4031_v56 = vld [vmem:[#allocation38_spill] sm:$0xff] }
  0xc0   : > { %v1009_v35 = vadd.f32 %v1001_v1, %v965_v57  ;;  %v1468_v45 = vmul.f32 %v4011_v36, %v3414_v26  ;;  %v1300_v13 = vmul.f32 %v4028_v47, %v3449_v0  ;;  %v1344_v29 = vmul.f32 %v4029_v5, %v3455_v46  ;;  %v4032_v1 = vld [vmem:[#allocation39_spill] sm:$0xff] }
  0xc1   : > { %v1220_v22 = vadd.f32 %v1212_v25, %v1176_v54  ;;  %v1388_v4 = vmul.f32 %v4030_v34, %v3470_v50  ;;  %v3518_v37 = vmul.f32 %v4012_v63, %v3474_v49  ;;  %v1512_v20 = vmul.f32 %v4013_v53, %v3438_v44  ;;  %v4033_v25 = vld [vmem:[#allocation21_spill] sm:$0xff] }
  0xc2   : > { %v1476_v30 = vadd.f32 %v1468_v45, %v1439_v19  ;;  %v1739_v58 = vadd.f32 %v3403_v43, %v1695_v12  ;;  %v1053_v60 = vadd.f32 %v1045_v17, %v1009_v35  ;;  %v1556_v48 = vmul.f32 %v3993_v2, %v3444_v21  ;;  %v4034_v12 = vld [vmem:[#allocation40_spill] sm:$0xff] }
  0xc3   : > { %v1264_v42 = vadd.f32 %v1256_v38, %v1220_v22  ;;  %v1768_v9 = vmul.f32 %v4014_v7, %v3414_v26  ;;  %v1600_v57 = vmul.f32 %v4031_v56, %v3449_v0  ;;  %v1644_v54 = vmul.f32 %v4032_v1, %v3455_v46  ;;  %v4036_v38 = vld [vmem:[#allocation42_spill] sm:$0xff] }
  0xc4   : > { %v1520_v41 = vadd.f32 %v1512_v20, %v1476_v30  ;;  %v3533_v19 = vmul.f32 %v4033_v25, %v3470_v50  ;;  %v3537_v17 = vmul.f32 %v4034_v12, %v3474_v49  ;;  %v1812_v45 = vmul.f32 %v4036_v38, %v3438_v44  ;;  %v4037_v30 = vld [vmem:[#allocation43_spill] sm:$0xff]  ;;  %v4038_v1 = vld [vmem:[#allocation6_spill] sm:$0xff]  ;;  %v4040_v12 = vld [vmem:[#allocation20_spill] sm:$0xff] }
  0xc5   : > { %v1308_v43 = vadd.f32 %v1300_v13, %v1264_v42  ;;  %v1776_v35 = vadd.f32 %v1768_v9, %v1739_v58  ;;  %v1856_v20 = vmul.f32 %v4037_v30, %v3444_v21  ;;  %v2039_v56 = vadd.f32 %v2031_v61, %v1995_v6  ;;  %v4039_v13 = vld [vmem:[#allocation44_spill] sm:$0xff]  ;;  %v3549_v58 = vld [vmem:[#allocation2 + $0x90] sm:$0xff]  ;;  %v858_v6 = vld [vmem:[#allocation2 + $0x98] sm:$0xff] }
  0xc6   : > { %4035 = vst [vmem:[#allocation18_spill] sm:$0xff] %v3537_v17  ;;  %v1564_v22 = vadd.f32 %v1556_v48, %v1520_v41  ;;  %v2068_v2 = vmul.f32 %v4038_v1, %v3414_v26  ;;  %v1097_v7 = vadd.f32 %v1089_v18, %v1053_v60  ;;  %v1900_v42 = vmul.f32 %v4039_v13, %v3449_v0 }
  0xc7   : > { %v1820_v25 = vadd.f32 %v1812_v45, %v1776_v35  ;;  %v1944_v17 = vmul.f32 %v4040_v12, %v3455_v46  ;;  %v1352_v9 = vadd.f32 %v1344_v29, %v1308_v43  ;;  %v2112_v48 = vmul.f32 %v4019_v8, %v3438_v44 }
  0xc8   : > { %v2076_v38 = vadd.f32 %v2068_v2, %v2039_v56  ;;  %v2156_v61 = vmul.f32 %v4020_v10, %v3444_v21  ;;  %v1608_v26 = vadd.f32 %v1600_v57, %v1564_v22  ;;  %v2200_v60 = vmul.f32 %v4021_v55, %v3449_v0 }
  0xc9   : > { %v1864_v18 = vadd.f32 %v1856_v20, %v1820_v25  ;;  %v841_v41 = vadd.f32 %v833_v14, %v797_v52  ;;  %v2244_v45 = vmul.f32 %v4022_v23, %v3455_v46  ;;  %v870_v2 = vmul.f32 %v2633_v33, %v3549_v58 }
  0xca   : > { %v2120_v35 = vadd.f32 %v2112_v48, %v2076_v38  ;;  %v886_v29 = vrot.slane %v3549_v58, 1  ;;  %v894_v56 = vrot.slane %v858_v6, 1  ;;  %v930_v21 = vrot.slane %v3549_v58, 2 }
  0xcb   : > { %v1908_v44 = vadd.f32 %v1900_v42, %v1864_v18  ;;  %v938_v43 = vrot.slane %v858_v6, 2  ;;  %v2288_v25 = vmul.f32 %v4023_v11, %v3470_v50  ;;  %v878_v0 = vadd.f32 %v870_v2, %v841_v41 }
  0xcc   : > { %v2164_v57 = vadd.f32 %v2156_v61, %v2120_v35  ;;  %v974_v14 = vrot.slane %v3549_v58, 3  ;;  %v1396_v52 = vadd.f32 %v1388_v4, %v1352_v9  ;;  %v3568_v46 = vsel %vm287_vm0, %v886_v29, %v894_v56 }
  0xcd   : > { %v3572_v33 = vsel %vm332_vm1, %v930_v21, %v938_v43  ;;  %v982_v38 = vrot.slane %v858_v6, 3  ;;  %v1652_v22 = vadd.f32 %v1644_v54, %v1608_v26  ;;  %v914_v42 = vmul.f32 %v2644_v40, %v3568_v46 }
  0xce   : > { %v2208_v20 = vadd.f32 %v2200_v60, %v2164_v57  ;;  %v1018_v48 = vrot.slane %v3549_v58, 4  ;;  %v1952_v61 = vadd.f32 %v1944_v17, %v1908_v44  ;;  %v1026_v9 = vrot.slane %v858_v6, 4 }
  0xcf   : > { %v3579_v4 = vsel %vm377_vm2, %v974_v14, %v982_v38  ;;  %v1062_v18 = vrot.slane %v3549_v58, 5  ;;  %v922_v35 = vadd.f32 %v914_v42, %v878_v0  ;;  %v958_v2 = vmul.f32 %v4005_v31, %v3572_v33  ;;  %v4041_v31 = vld [vmem:[#allocation13_spill] sm:$0xff] }
  0xd0   : > { %v2252_v41 = vadd.f32 %v2244_v45, %v2208_v20  ;;  %v1070_v54 = vrot.slane %v858_v6, 5  ;;  %v3586_v26 = vsel %vm422_vm3, %v1018_v48, %v1026_v9  ;;  %v1106_v40 = vrot.slane %v3549_v58, 6 }
  0xd1   : > { %v1114_v17 = vrot.slane %v858_v6, 6  ;;  %v1141_v60 = vadd.f32 %v3501_v28, %v1097_v7  ;;  %v2332_v44 = vmul.f32 %v4024_v24, %v3474_v49  ;;  %v966_v56 = vadd.f32 %v958_v2, %v922_v35  ;;  %v4043_v2 = vld [vmem:[#allocation41_spill] sm:$0xff] }
  0xd2   : > { %v2296_v29 = vadd.f32 %v2288_v25, %v2252_v41  ;;  %v1002_v45 = vmul.f32 %v4025_v62, %v3579_v4  ;;  %v1988_v21 = vmul.f32 %v4041_v31, %v3470_v50  ;;  %v2032_v43 = vmul.f32 %v3115_v15, %v3474_v49  ;;  %v4042_v41 = vld [vmem:[#allocation18_spill] sm:$0xff] }
  0xd3   : > { %v3600_v6 = vsel %vm467_vm4, %v1062_v18, %v1070_v54  ;;  %v1169_v7 = vmul.f32 %v4004_v59, %v3549_v58  ;;  %v1046_v25 = vmul.f32 %v4026_v39, %v3586_v26  ;;  %v3608_v62 = vsel %vm512_vm5, %v1106_v40, %v1114_v17 }
  0xd4   : > { %v2340_v28 = vadd.f32 %v2332_v44, %v2296_v29  ;;  %v1010_v57 = vadd.f32 %v1002_v45, %v966_v56  ;;  %v1696_v50 = vadd.f32 %v3533_v19, %v1652_v22  ;;  %v1996_v0 = vadd.f32 %v1988_v21, %v1952_v61  ;;  %v4045_v44 = vld [vmem:[#allocation38_spill] sm:$0xff]  ;;  %v4046_v21 = vld [vmem:[#allocation39_spill] sm:$0xff] }
  0xd5   : > { %v1177_v49 = vadd.f32 %v1169_v7, %v1141_v60  ;;  %v1213_v14 = vmul.f32 %v4009_v16, %v3568_v46  ;;  %v1090_v20 = vmul.f32 %v4027_v32, %v3600_v6  ;;  %v1440_v42 = vadd.f32 %v3518_v37, %v1396_v52  ;;  %v4044_v60 = vld [vmem:[#allocation37_spill] sm:$0xff] }
  0xd6   : > { %v1054_v38 = vadd.f32 %v1046_v25, %v1010_v57  ;;  %v1469_v39 = vmul.f32 %v4011_v36, %v3549_v58  ;;  %2348 = vst [vmem:[%s2517_s23 + $0x11] sm:$0xff] %v2340_v28  ;;  %v1134_v48 = vmul.f32 %v4010_v27, %v3608_v62  ;;  %v1257_v19 = vmul.f32 %v3978_v51, %v3572_v33  ;;  %v4047_v57 = vld [vmem:[#allocation42_spill] sm:$0xff] }
  0xd7   : > { %v1221_v9 = vadd.f32 %v1213_v14, %v1177_v49  ;;  %v1301_v22 = vmul.f32 %v4028_v47, %v3579_v4  ;;  %v1345_v61 = vmul.f32 %v4029_v5, %v3586_v26  ;;  %v1389_v32 = vmul.f32 %v4030_v34, %v3600_v6  ;;  %v4048_v49 = vld [vmem:[#allocation21_spill] sm:$0xff] }
  0xd8   : > { %v1477_v37 = vadd.f32 %v1469_v39, %v1440_v42  ;;  %v1513_v52 = vmul.f32 %v4013_v53, %v3568_v46  ;;  %v3633_v27 = vmul.f32 %v4012_v63, %v3608_v62  ;;  %v1740_v35 = vadd.f32 %v4042_v41, %v1696_v50 }
  0xd9   : > { %v1265_v18 = vadd.f32 %v1257_v19, %v1221_v9  ;;  %v1769_v54 = vmul.f32 %v4043_v2, %v3549_v58  ;;  %v1098_v40 = vadd.f32 %v1090_v20, %v1054_v38  ;;  %v1557_v29 = vmul.f32 %v4044_v60, %v3572_v33 }
  0xda   : > { %v1521_v17 = vadd.f32 %v1513_v52, %v1477_v37  ;;  %v1601_v56 = vmul.f32 %v4045_v44, %v3579_v4  ;;  %v1645_v7 = vmul.f32 %v4046_v21, %v3586_v26  ;;  %v1813_v25 = vmul.f32 %v4047_v57, %v3568_v46 }
  0xdb   : > { %v1309_v45 = vadd.f32 %v1301_v22, %v1265_v18  ;;  %v1777_v28 = vadd.f32 %v1769_v54, %v1740_v35  ;;  %v1689_v14 = vmul.f32 %v4048_v49, %v3600_v6  ;;  %v2040_v38 = vadd.f32 %v2032_v43, %v1996_v0  ;;  %v3654_v22 = vld [vmem:[#allocation2 + $0xa0] sm:$0xff]  ;;  %v1158_v0 = vld [vmem:[#allocation2 + $0xa8] sm:$0xff] }
  0xdc   : > { %v1565_v50 = vadd.f32 %v1557_v29, %v1521_v17  ;;  %v2069_v20 = vmul.f32 %v4038_v1, %v3549_v58  ;;  %v1857_v9 = vmul.f32 %v4037_v30, %v3572_v33  ;;  %v1901_v19 = vmul.f32 %v4039_v13, %v3579_v4 }
  0xdd   : > { %v1353_v42 = vadd.f32 %v1345_v61, %v1309_v45  ;;  %v1821_v39 = vadd.f32 %v1813_v25, %v1777_v28  ;;  %v1945_v52 = vmul.f32 %v4040_v12, %v3586_v26  ;;  %v2113_v43 = vmul.f32 %v4019_v8, %v3568_v46 }
  0xde   : > { %v1609_v37 = vadd.f32 %v1601_v56, %v1565_v50  ;;  %v2077_v18 = vadd.f32 %v2069_v20, %v2040_v38  ;;  %v1989_v61 = vmul.f32 %v4041_v31, %v3600_v6  ;;  %v2157_v41 = vmul.f32 %v4020_v10, %v3572_v33 }
  0xdf   : > { %v1865_v58 = vadd.f32 %v1857_v9, %v1821_v39  ;;  %v2201_v35 = vmul.f32 %v4021_v55, %v3579_v4  ;;  %v2245_v17 = vmul.f32 %v4022_v23, %v3586_v26  ;;  %v1142_v29 = vadd.f32 %v1134_v48, %v1098_v40 }
  0xe0   : > { %v2121_v54 = vadd.f32 %v2113_v43, %v2077_v18  ;;  %v1170_v56 = vmul.f32 %v4004_v59, %v3654_v22  ;;  %v1397_v46 = vadd.f32 %v1389_v32, %v1353_v42  ;;  %v1186_v45 = vrot.slane %v3654_v22, 1 }
  0xe1   : > { %v1194_v28 = vrot.slane %v1158_v0, 1  ;;  %v1230_v25 = vrot.slane %v3654_v22, 2  ;;  %v1653_v50 = vadd.f32 %v1645_v7, %v1609_v37  ;;  %v1238_v20 = vrot.slane %v1158_v0, 2 }
  0xe2   : > { %v2165_v38 = vadd.f32 %v2157_v41, %v2121_v54  ;;  %v1178_v33 = vadd.f32 %v1170_v56, %v1142_v29  ;;  %v1909_v39 = vadd.f32 %v1901_v19, %v1865_v58  ;;  %v1274_v26 = vrot.slane %v3654_v22, 3 }
  0xe3   : > { %v1202_v4 = vsel %vm287_vm0, %v1186_v45, %v1194_v28  ;;  %v1282_v48 = vrot.slane %v1158_v0, 3  ;;  %v3678_v32 = vsel %vm332_vm1, %v1230_v25, %v1238_v20  ;;  %v1318_v42 = vrot.slane %v3654_v22, 4  ;;  %v4049_v25 = vld [vmem:[#allocation40_spill] sm:$0xff] }
  0xe4   : > { %v2209_v40 = vadd.f32 %v2201_v35, %v2165_v38  ;;  %v1214_v59 = vmul.f32 %v4009_v16, %v1202_v4  ;;  %v2289_v7 = vmul.f32 %v4023_v11, %v3600_v6  ;;  %v2333_v9 = vmul.f32 %v4024_v24, %v3608_v62 }
  0xe5   : > { %v3687_v19 = vsel %vm377_vm2, %v1274_v26, %v1282_v48  ;;  %v1326_v37 = vrot.slane %v1158_v0, 4  ;;  %v1258_v16 = vmul.f32 %v3978_v51, %v3678_v32  ;;  %v1362_v58 = vrot.slane %v3654_v22, 5 }
  0xe6   : > { %v2253_v18 = vadd.f32 %v2245_v17, %v2209_v40  ;;  %v1222_v43 = vadd.f32 %v1214_v59, %v1178_v33  ;;  %v1697_v41 = vadd.f32 %v1689_v14, %v1653_v50  ;;  %v1953_v35 = vadd.f32 %v1945_v52, %v1909_v39 }
  0xe7   : > { %v3694_v6 = vsel %vm422_vm3, %v1318_v42, %v1326_v37  ;;  %v1370_v54 = vrot.slane %v1158_v0, 5  ;;  %v1302_v45 = vmul.f32 %v4028_v47, %v3687_v19  ;;  %v1441_v17 = vadd.f32 %v3633_v27, %v1397_v46  ;;  %v2431_v42 = vld [vmem:[#allocation2] sm:$0xff] }
  0xe8   : > { %v2297_v29 = vadd.f32 %v2289_v7, %v2253_v18  ;;  %v1266_v56 = vadd.f32 %v1258_v16, %v1222_v43  ;;  %v1406_v14 = vrot.slane %v3654_v22, 6  ;;  %v1414_v52 = vrot.slane %v1158_v0, 6  ;;  %v4050_v43 = vld [vmem:[#allocation3_spill] sm:$0xff] }
  0xe9   : > { %v3701_v51 = vsel %vm467_vm4, %v1362_v58, %v1370_v54  ;;  %v1470_v28 = vmul.f32 %v4011_v36, %v3654_v22  ;;  %v1733_v50 = vmul.f32 %v4049_v25, %v3608_v62  ;;  %v1346_v47 = vmul.f32 %v4029_v5, %v3694_v6  ;;  %v4051_v58 = vld [vmem:[#allocation4_spill] sm:$0xff] }
  0xea   : > { %v2341_v38 = vadd.f32 %v2333_v9, %v2297_v29  ;;  %v1310_v33 = vadd.f32 %v1302_v45, %v1266_v56  ;;  %v1997_v27 = vadd.f32 %v1989_v61, %v1953_v35  ;;  %v1514_v20 = vmul.f32 %v4013_v53, %v1202_v4 }
  0xeb   : > { %v1478_v46 = vadd.f32 %v1470_v28, %v1441_v17  ;;  %v2033_v39 = vmul.f32 %v3115_v15, %v3608_v62  ;;  %v1390_v0 = vmul.f32 %v4030_v34, %v3701_v51  ;;  %v1741_v48 = vadd.f32 %v1733_v50, %v1697_v41  ;;  %v4052_v17 = vld [vmem:[#allocation5_spill] sm:$0xff] }
  0xec   : > { %v1354_v26 = vadd.f32 %v1346_v47, %v1310_v33  ;;  %2349 = vst [vmem:[%s2517_s23 + $0x19] sm:$0xff] %v2341_v38  ;;  %v1422_v40 = vsel %vm512_vm5, %v1406_v14, %v1414_v52  ;;  %v1558_v5 = vmul.f32 %v4044_v60, %v3678_v32  ;;  %v1770_v61 = vmul.f32 %v4043_v2, %v3654_v22 }
  0xed   : > { %v1522_v59 = vadd.f32 %v1514_v20, %v1478_v46  ;;  %v1471_v7 = vmul.f32 %v2431_v42, %v4011_v36  ;;  %v1602_v9 = vmul.f32 %v4045_v44, %v3687_v19  ;;  %v1814_v18 = vmul.f32 %v4047_v57, %v1202_v4 }
  0xee   : > { %v1398_v62 = vadd.f32 %v1390_v0, %v1354_v26  ;;  %v1778_v37 = vadd.f32 %v1770_v61, %v1741_v48  ;;  %v2041_v3 = vadd.f32 %v2033_v39, %v1997_v27  ;;  %v1515_v16 = vmul.f32 %v4013_v53, %v4050_v43  ;;  %v4053_v39 = vld [vmem:[#allocation10_spill] sm:$0xff] }
  0xef   : > { %v1566_v34 = vadd.f32 %v1558_v5, %v1522_v59  ;;  %v1559_v41 = vmul.f32 %v4044_v60, %v4051_v58  ;;  %v1434_v35 = vmul.f32 %v4012_v63, %v1422_v40  ;;  %v2070_v36 = vmul.f32 %v4038_v1, %v3654_v22 }
  0xf0   : > { %v1646_v29 = vmul.f32 %v4046_v21, %v3694_v6  ;;  %v1822_v56 = vadd.f32 %v1814_v18, %v1778_v37  ;;  %v1858_v45 = vmul.f32 %v4037_v30, %v3678_v32  ;;  %v1603_v14 = vmul.f32 %v4045_v44, %v4052_v17 }
  0xf1   : > { %v1610_v54 = vadd.f32 %v1602_v9, %v1566_v34  ;;  %v2078_v53 = vadd.f32 %v2070_v36, %v2041_v3  ;;  %v2114_v52 = vmul.f32 %v4019_v8, %v1202_v4  ;;  %v1442_v60 = vadd.f32 %v1434_v35, %v1398_v62 }
  0xf2   : > { %v1690_v63 = vmul.f32 %v4048_v49, %v3701_v51  ;;  %v1866_v22 = vadd.f32 %v1858_v45, %v1822_v56  ;;  %v1902_v50 = vmul.f32 %v4039_v13, %v3687_v19  ;;  %v1771_v38 = vmul.f32 %v2431_v42, %v4043_v2 }
  0xf3   : > { %v1654_v28 = vadd.f32 %v1646_v29, %v1610_v54  ;;  %v2122_v33 = vadd.f32 %v2114_v52, %v2078_v53  ;;  %v2158_v47 = vmul.f32 %v4020_v10, %v3678_v32  ;;  %v1479_v27 = vadd.f32 %v1471_v7, %v1442_v60 }
  0xf4   : > { %v1734_v46 = vmul.f32 %v4049_v25, %v1422_v40  ;;  %v1910_v4 = vadd.f32 %v1902_v50, %v1866_v22  ;;  %v1946_v20 = vmul.f32 %v4040_v12, %v3694_v6  ;;  %v1647_v26 = vmul.f32 %v4046_v21, %v4053_v39 }
  0xf5   : > { %v1698_v44 = vadd.f32 %v1690_v63, %v1654_v28  ;;  %v2166_v0 = vadd.f32 %v2158_v47, %v2122_v33  ;;  %v2202_v48 = vmul.f32 %v4021_v55, %v3687_v19  ;;  %v1523_v2 = vadd.f32 %v1515_v16, %v1479_v27 }
  0xf6   : > { %v1815_v59 = vmul.f32 %v4047_v57, %v4050_v43  ;;  %v1954_v32 = vadd.f32 %v1946_v20, %v1910_v4  ;;  %v1990_v5 = vmul.f32 %v4041_v31, %v3701_v51  ;;  %v1859_v7 = vmul.f32 %v4037_v30, %v4051_v58  ;;  %v4054_v57 = vld [vmem:[#allocation16_spill] sm:$0xff] }
  0xf7   : > { %v1742_v61 = vadd.f32 %v1734_v46, %v1698_v44  ;;  %v2210_v62 = vadd.f32 %v2202_v48, %v2166_v0  ;;  %v2246_v21 = vmul.f32 %v4022_v23, %v3694_v6  ;;  %v1567_v9 = vadd.f32 %v1559_v41, %v1523_v2 }
  0xf8   : > { %v2071_v34 = vmul.f32 %v2431_v42, %v4038_v1  ;;  %v1998_v19 = vadd.f32 %v1990_v5, %v1954_v32  ;;  %v2034_v37 = vmul.f32 %v3115_v15, %v1422_v40  ;;  %v1691_v3 = vmul.f32 %v4048_v49, %v4054_v57  ;;  %v4055_v42 = vld [vmem:[#allocation19_spill] sm:$0xff] }
  0xf9   : > { %v1779_v18 = vadd.f32 %v1771_v38, %v1742_v61  ;;  %v2254_v16 = vadd.f32 %v2246_v21, %v2210_v62  ;;  %v2290_v35 = vmul.f32 %v4023_v11, %v3701_v51  ;;  %v1611_v36 = vadd.f32 %v1603_v14, %v1567_v9 }
  0xfa   : > { %v1903_v30 = vmul.f32 %v4039_v13, %v4052_v17  ;;  %v2115_v6 = vmul.f32 %v4019_v8, %v4050_v43  ;;  %v2042_v41 = vadd.f32 %v2034_v37, %v1998_v19  ;;  %v1735_v54 = vmul.f32 %v4049_v25, %v4055_v42 }
  0xfb   : > { %v1823_v1 = vadd.f32 %v1815_v59, %v1779_v18  ;;  %v2298_v29 = vadd.f32 %v2290_v35, %v2254_v16  ;;  %v2334_v49 = vmul.f32 %v4024_v24, %v1422_v40  ;;  %v1655_v56 = vadd.f32 %v1647_v26, %v1611_v36 }
  0xfc   : > { %v1947_v51 = vmul.f32 %v4040_v12, %v4053_v39  ;;  %v2159_v45 = vmul.f32 %v4020_v10, %v4051_v58  ;;  %v2079_v14 = vadd.f32 %v2071_v34, %v2042_v41  ;;  %v1991_v43 = vmul.f32 %v4041_v31, %v4054_v57 }
  0xfd   : > { %v1867_v13 = vadd.f32 %v1859_v7, %v1823_v1  ;;  %v2342_v53 = vadd.f32 %v2334_v49, %v2298_v29  ;;  %v1699_v8 = vadd.f32 %v1691_v3, %v1655_v56  ;;  %v2203_v25 = vmul.f32 %v4021_v55, %v4052_v17 }
  0xfe   : > { %v2123_v60 = vadd.f32 %v2115_v6, %v2079_v14  ;;  %v2035_v12 = vmul.f32 %v3115_v15, %v4055_v42  ;;  %v2247_v10 = vmul.f32 %v4022_v23, %v4053_v39  ;;  %v2291_v31 = vmul.f32 %v4023_v11, %v4054_v57 }
  0xff   : > { %v1911_v52 = vadd.f32 %v1903_v30, %v1867_v13  ;;  %2350 = vst [vmem:[%s2517_s23 + $0x21] sm:$0xff] %v2342_v53  ;;  %v1743_v40 = vadd.f32 %v1735_v54, %v1699_v8  ;;  %v2335_v17 = vmul.f32 %v4024_v24, %v4055_v42 }
 0x100   : > { %v2167_v28 = vadd.f32 %v2159_v45, %v2123_v60 }
 0x101   : > { %v1955_v58 = vadd.f32 %v1947_v51, %v1911_v52  ;;  %v1780_v63 = vadd.f32 %v1771_v38, %v1743_v40 }
 0x102   : > { %v2211_v50 = vadd.f32 %v2203_v25, %v2167_v28 }
 0x103   : > { %v1999_v22 = vadd.f32 %v1991_v43, %v1955_v58  ;;  %v1824_v55 = vadd.f32 %v1815_v59, %v1780_v63 }
 0x104   : > { %v2255_v47 = vadd.f32 %v2247_v10, %v2211_v50 }
 0x105   : > { %v2043_v33 = vadd.f32 %v2035_v12, %v1999_v22  ;;  %v1868_v27 = vadd.f32 %v1859_v7, %v1824_v55 }
 0x106   : > { %v2299_v44 = vadd.f32 %v2291_v31, %v2255_v47 }
 0x107   : > { %v2080_v15 = vadd.f32 %v2071_v34, %v2043_v33  ;;  %v1912_v23 = vadd.f32 %v1903_v30, %v1868_v27 }
 0x108   : > { %v2343_v4 = vadd.f32 %v2335_v17, %v2299_v44 }
 0x109   : > { %v2124_v46 = vadd.f32 %v2115_v6, %v2080_v15  ;;  %v1956_v38 = vadd.f32 %v1947_v51, %v1912_v23 }
 0x10a   : > { %2351 = vst [vmem:[%s2517_s23 + $0x29] sm:$0xff] %v2343_v4 }
 0x10b   : > { %v2168_v20 = vadd.f32 %v2159_v45, %v2124_v46  ;;  %v2000_v11 = vadd.f32 %v1991_v43, %v1956_v38 }
 0x10d   : > { %v2212_v39 = vadd.f32 %v2203_v25, %v2168_v20  ;;  %v2044_v26 = vadd.f32 %v2035_v12, %v2000_v11 }
 0x10f   : > { %v2256_v0 = vadd.f32 %v2247_v10, %v2212_v39  ;;  %v2081_v48 = vadd.f32 %v2071_v34, %v2044_v26 }
 0x111   : > { %v2300_v2 = vadd.f32 %v2291_v31, %v2256_v0  ;;  %v2125_v24 = vadd.f32 %v2115_v6, %v2081_v48 }
 0x113   : > { %v2344_v59 = vadd.f32 %v2335_v17, %v2300_v2  ;;  %v2169_v32 = vadd.f32 %v2159_v45, %v2125_v24 }
 0x115   : > { %2352 = vst [vmem:[%s2517_s23 + $0x31] sm:$0xff] %v2344_v59  ;;  %v2213_v5 = vadd.f32 %v2203_v25, %v2169_v32 }
 0x117   : > { %v2257_v61 = vadd.f32 %v2247_v10, %v2213_v5 }
 0x119   : > { %v2301_v7 = vadd.f32 %v2291_v31, %v2257_v61 }
 0x11b   : > { %v2345_v62 = vadd.f32 %v2335_v17, %v2301_v7 }
 0x11d   : > { %2353 = vst [vmem:[%s2517_s23 + $0x39] sm:$0xff] %v2345_v62 }
 0x11e PF: > { %s13_s12 = sadd.s32 1, %s2438_s12  }
 0x11f   : > { %p10_p4 = scmp.ge.s32.totalorder %s13_s12, 4  }
 0x121   :  { %12 = sbr.rel (!%p10_p4) target bundleno = 1 (0x1), region = 69 }

</bundles_post_ra>
